<compile_context>
chip_gen: v7x
topology: tpu7x:2x2x1
jax: 0.10.0
libtpu: 0.0.40
codegen_flags: <defaults>
</compile_context>

<pallas_src>
import jax
import jax.numpy as jnp
from jax import lax
from jax.experimental import pallas as pl
from jax.experimental.pallas import tpu as pltpu

# ---- hyperparameters (scaled down from the module, TPU lane-friendly) ----
VOCAB_SIZE = 128          # lane-dense lm_head output
N_EMBD = 128              # lane-dense embedding width
N_HEAD = 4
N_LAYER = 2
BLOCK_SIZE = 32           # max context length
HEAD_SIZE = N_EMBD // N_HEAD
LN_EPS = 1e-5
NEG_MASK = -1e30          # finite "minus infinity" for the causal mask

BATCH = 2
SEQ = 16                  # T <= BLOCK_SIZE


def _layer_norm(x, g, b):
    mean = jnp.mean(x, axis=-1, keepdims=True)
    c = x - mean
    var = jnp.mean(c * c, axis=-1, keepdims=True)
    return c * lax.rsqrt(var + LN_EPS) * g + b


# rows of the packed per-layer vector table (8, C)
_BP, _B2, _LN1G, _LN1B, _LN2G, _LN2B = range(6)


# ------------------------------ fused GPT kernel ------------------------------
def gpt_kernel(x_ref, wqkv_ref, wp_ref,
               w1_ref, b1_ref, w2_ref, vec_ref,
               lnf_ref, wlm_ref, blm_ref,
               o_ref, act_ref):
    """Grid step = (batch element b, layer l).  Activation lives in VMEM
    scratch `act_ref` across the layer axis; the last layer also runs ln_f +
    lm_head and writes the logits block."""
    l = pl.program_id(1)
    n_layers = pl.num_programs(1)

    @pl.when(l == 0)
    def _():
        act_ref[...] = x_ref[...].astype(jnp.float32)

    x = act_ref[...]                                    # (T, C) f32
    T = x.shape[0]
    vecs = vec_ref[...]                                 # (8, C)

    # ---- multi-head causal self-attention (heads = batched-dot axis) ----
    # One batched matmul produces Q, K, V for every head: weights are stacked
    # along the batch axis as (3H, C, D) with 1/sqrt(D) already folded into Wq.
    xb = jnp.broadcast_to(x[None], (3 * N_HEAD, T, N_EMBD))           # (3H, T, C)
    qkv = jnp.einsum('gtc,gcd->gtd', xb, wqkv_ref[...],
                     preferred_element_type=jnp.float32)              # (3H, T, D)
    q = qkv[:N_HEAD]                                                  # (H, T, D)
    k = qkv[N_HEAD:2 * N_HEAD]
    v = qkv[2 * N_HEAD:]

    row = lax.broadcasted_iota(jnp.int32, (T, T), 0)
    col = lax.broadcasted_iota(jnp.int32, (T, T), 1)
    causal = (row >= col)[None]                                       # (1, T, T)

    wei = jnp.einsum('htd,hsd->hts', q, k,
                     preferred_element_type=jnp.float32)              # (H, T, T)
    wei = jnp.where(causal, wei, NEG_MASK)
    wei = wei - jnp.max(wei, axis=-1, keepdims=True)
    p = jnp.exp(wei)
    p = p * pl.reciprocal(jnp.sum(p, axis=-1, keepdims=True), approx=True)

    att = jnp.einsum('hts,hsd->htd', p, v,
                     preferred_element_type=jnp.float32)              # (H, T, D)
    y = jnp.einsum('htd,hdc->htc', att, wp_ref[...],
                   preferred_element_type=jnp.float32)                # (H, T, C)
    y = jnp.sum(y, axis=0) + vecs[_BP:_BP + 1]                        # (T, C)

    x = _layer_norm(x + y, vecs[_LN1G:_LN1G + 1], vecs[_LN1B:_LN1B + 1])

    # ---- feed-forward: Linear -> ReLU -> Linear ----
    h1 = jnp.dot(x, w1_ref[...], preferred_element_type=jnp.float32) + b1_ref[...]
    h1 = jnp.maximum(h1, 0.0)
    y = jnp.dot(h1, w2_ref[...], preferred_element_type=jnp.float32) + vecs[_B2:_B2 + 1]
    x = _layer_norm(x + y, vecs[_LN2G:_LN2G + 1], vecs[_LN2B:_LN2B + 1])

    act_ref[...] = x

    # ---- fused final LayerNorm + lm_head on the last layer iteration ----
    @pl.when(l == n_layers - 1)
    def _():
        lnf = lnf_ref[...]                                            # (2, C)
        xf = _layer_norm(x, lnf[0:1], lnf[1:2])
        logits = (jnp.dot(xf, wlm_ref[...], preferred_element_type=jnp.float32)
                  + blm_ref[...])
        o_ref[...] = logits.astype(o_ref.dtype)


# --------------------------- param stacking for kernel -------------------------
def _stack_layer_params(blocks):
    C, H, D = N_EMBD, N_HEAD, HEAD_SIZE
    scale = D ** -0.5

    def per_head_in(w):   # (C, C) columns grouped by head -> (H, C, D)
        return w.reshape(C, H, D).transpose(1, 0, 2)

    def per_head_out(w):  # (C, C) rows grouped by head -> (H, D, C)
        return w.reshape(H, D, C)

    # Q/K/V fused into one (3H, C, D) slab per layer; attention scale folded
    # into the Q projection.
    wqkv = jnp.stack([
        jnp.concatenate([per_head_in(b["wq"]) * scale,
                         per_head_in(b["wk"]),
                         per_head_in(b["wv"])], axis=0)
        for b in blocks])                                            # (L, 3H, C, D)
    wp = jnp.stack([per_head_out(b["wp"]) for b in blocks])          # (L, H, D, C)
    w1 = jnp.stack([b["w1"] for b in blocks])                        # (L, C, 4C)
    b1 = jnp.stack([b["b1"] for b in blocks])                        # (L, 1, 4C)
    w2 = jnp.stack([b["w2"] for b in blocks])                        # (L, 4C, C)
    zeros = jnp.zeros((1, C), jnp.float32)
    vecs = jnp.stack([
        jnp.concatenate([b["bp"], b["b2"], b["ln1g"], b["ln1b"],
                         b["ln2g"], b["ln2b"], zeros, zeros], axis=0)
        for b in blocks])                                            # (L, 8, C)
    return wqkv, wp, w1, b1, w2, vecs


# --------------------------------- forward ------------------------------------
def gpt_forward(params, index):
    B, T = index.shape
    C, V, H, D = N_EMBD, VOCAB_SIZE, N_HEAD, HEAD_SIZE

    # token + position embedding gather stays in plain JAX (glue)
    x = (jnp.take(params["tok_emb"], index, axis=0)
         + params["pos_emb"][:T][None]).astype(jnp.float32)          # (B, T, C)

    wqkv, wp, w1, b1, w2, vecs = _stack_layer_params(params["blocks"])
    lnf = jnp.concatenate([params["lnfg"], params["lnfb"]], axis=0)  # (2, C)

    batch_map = lambda b, l: (b, 0, 0)
    layer3 = lambda b, l: (l, 0, 0)
    layer4 = lambda b, l: (l, 0, 0, 0)
    const2 = lambda b, l: (0, 0)

    in_specs = [
        pl.BlockSpec((None, T, C), batch_map),          # x
        pl.BlockSpec((None, 3 * H, C, D), layer4),      # fused Wq|Wk|Wv (pre-scaled)
        pl.BlockSpec((None, H, D, C), layer4),          # wp
        pl.BlockSpec((None, C, 4 * C), layer3),         # w1
        pl.BlockSpec((None, 1, 4 * C), layer3),         # b1
        pl.BlockSpec((None, 4 * C, C), layer3),         # w2
        pl.BlockSpec((None, 8, C), layer3),             # packed per-layer vectors
        pl.BlockSpec((2, C), const2),                   # ln_f gamma/beta
        pl.BlockSpec((C, V), const2),                   # lm_head weight
        pl.BlockSpec((1, V), const2),                   # lm_head bias
    ]
    out_specs = pl.BlockSpec((None, T, V), batch_map)

    return pl.pallas_call(
        gpt_kernel,
        out_shape=jax.ShapeDtypeStruct((B, T, V), jnp.float32),
        grid=(B, N_LAYER),
        in_specs=in_specs,
        out_specs=out_specs,
        scratch_shapes=[pltpu.VMEM((T, C), jnp.float32)],
        compiler_params=pltpu.CompilerParams(
            dimension_semantics=("parallel", "arbitrary"),
            vmem_limit_bytes=32 * 1024 * 1024),
    )(x, wqkv, wp, w1, b1, w2, vecs, lnf,
      params["w_lm"], params["b_lm"])


# ------------------------------ parameter init --------------------------------
def init_params(key):
    def normal(k, shape):
        return (0.02 * jax.random.normal(k, shape)).astype(jnp.float32)

    keys = iter(jax.random.split(key, 8 + N_LAYER * 8))
    params = {
        "tok_emb": normal(next(keys), (VOCAB_SIZE, N_EMBD)),
        "pos_emb": normal(next(keys), (BLOCK_SIZE, N_EMBD)),
        "lnfg": jnp.ones((1, N_EMBD), jnp.float32),
        "lnfb": jnp.zeros((1, N_EMBD), jnp.float32),
        "w_lm": normal(next(keys), (N_EMBD, VOCAB_SIZE)),
        "b_lm": jnp.zeros((1, VOCAB_SIZE), jnp.float32),
        "blocks": [],
    }
    for _ in range(N_LAYER):
        blk = {
            "wq": normal(next(keys), (N_EMBD, N_EMBD)),
            "wk": normal(next(keys), (N_EMBD, N_EMBD)),
            "wv": normal(next(keys), (N_EMBD, N_EMBD)),
            "wp": normal(next(keys), (N_EMBD, N_EMBD)),
            "bp": jnp.zeros((1, N_EMBD), jnp.float32),
            "w1": normal(next(keys), (N_EMBD, 4 * N_EMBD)),
            "b1": jnp.zeros((1, 4 * N_EMBD), jnp.float32),
            "w2": normal(next(keys), (4 * N_EMBD, N_EMBD)),
            "b2": jnp.zeros((1, N_EMBD), jnp.float32),
            "ln1g": jnp.ones((1, N_EMBD), jnp.float32),
            "ln1b": jnp.zeros((1, N_EMBD), jnp.float32),
            "ln2g": jnp.ones((1, N_EMBD), jnp.float32),
            "ln2b": jnp.zeros((1, N_EMBD), jnp.float32),
        }
        params["blocks"].append(blk)
    return params


# ------------------------------ pure-JAX reference -----------------------------
def _ref_forward(params, index):
    B, T = index.shape
    x = jnp.take(params["tok_emb"], index, axis=0) + params["pos_emb"][:T][None]
    causal = jnp.arange(T)[:, None] >= jnp.arange(T)[None, :]
    for p in params["blocks"]:
        q = x @ p["wq"]; k = x @ p["wk"]; v = x @ p["wv"]
        hs = HEAD_SIZE
        outs = []
        for h in range(N_HEAD):
            sl = slice(h * hs, (h + 1) * hs)
            wei = jnp.einsum("btd,bsd->bts", q[..., sl], k[..., sl]) * hs ** -0.5
            wei = jnp.where(causal[None], wei, -jnp.inf)
            wei = jax.nn.softmax(wei, axis=-1)
            outs.append(jnp.einsum("bts,bsd->btd", wei, v[..., sl]))
        y = jnp.concatenate(outs, axis=-1) @ p["wp"] + p["bp"]
        x = _layer_norm(x + y, p["ln1g"], p["ln1b"])
        y = jnp.maximum(x @ p["w1"] + p["b1"], 0.0) @ p["w2"] + p["b2"]
        x = _layer_norm(x + y, p["ln2g"], p["ln2b"])
    x = _layer_norm(x, params["lnfg"], params["lnfb"])
    return x @ params["w_lm"] + params["b_lm"]


if __name__ == "__main__":
    key = jax.random.PRNGKey(0)
    k_param, k_idx = jax.random.split(key)
    params = init_params(k_param)
    index = jax.random.randint(k_idx, (BATCH, SEQ), 0, VOCAB_SIZE, dtype=jnp.int32)

    logits = jax.jit(gpt_forward)(params, index)
    logits = jax.block_until_ready(logits)
    assert logits.shape == (BATCH, SEQ, VOCAB_SIZE)

    ref = _ref_forward(params, index)
    assert jnp.allclose(logits, ref, rtol=1e-2, atol=1e-2), "mismatch vs reference"

    print("KERNEL_OK")
</pallas_src>

<mosaic_0001>
module attributes {stable_mosaic.version = 11 : i64} {
  func.func @gpt_kernel(%arg0: i32, %arg1: i32, %arg2: memref<1x16x128xf32, #tpu.memory_space<vmem>>, %arg3: memref<1x12x128x32xf32, #tpu.memory_space<vmem>>, %arg4: memref<1x4x32x128xf32, #tpu.memory_space<vmem>>, %arg5: memref<1x128x512xf32, #tpu.memory_space<vmem>>, %arg6: memref<1x1x512xf32, #tpu.memory_space<vmem>>, %arg7: memref<1x512x128xf32, #tpu.memory_space<vmem>>, %arg8: memref<1x8x128xf32, #tpu.memory_space<vmem>>, %arg9: memref<2x128xf32, #tpu.memory_space<vmem>>, %arg10: memref<128x128xf32, #tpu.memory_space<vmem>>, %arg11: memref<1x128xf32, #tpu.memory_space<vmem>>, %arg12: memref<1x16x128xf32, #tpu.memory_space<vmem>>, %arg13: memref<16x128xf32, #tpu.memory_space<vmem>>) attributes {dimension_semantics = [#tpu.dimension_semantics<parallel>, #tpu.dimension_semantics<arbitrary>], iteration_bounds = array<i64: 2, 2>, scalar_prefetch = 0 : i64, scratch_operands = 1 : i64, tpu.core_type = #tpu.core_type<tc>, window_params = [{transform_indices = @transform_0, window_bounds = array<i64: 1, 16, 128>}, {transform_indices = @transform_1, window_bounds = array<i64: 1, 12, 128, 32>}, {transform_indices = @transform_2, window_bounds = array<i64: 1, 4, 32, 128>}, {transform_indices = @transform_3, window_bounds = array<i64: 1, 128, 512>}, {transform_indices = @transform_4, window_bounds = array<i64: 1, 1, 512>}, {transform_indices = @transform_5, window_bounds = array<i64: 1, 512, 128>}, {transform_indices = @transform_6, window_bounds = array<i64: 1, 8, 128>}, {pipeline_mode = #tpu.pipeline_mode<synchronous>, transform_indices = @transform_7, window_bounds = array<i64: 2, 128>}, {pipeline_mode = #tpu.pipeline_mode<synchronous>, transform_indices = @transform_8, window_bounds = array<i64: 128, 128>}, {pipeline_mode = #tpu.pipeline_mode<synchronous>, transform_indices = @transform_9, window_bounds = array<i64: 1, 128>}, {transform_indices = @transform_10, window_bounds = array<i64: 1, 16, 128>}]} {
    %c0_i32 = arith.constant 0 : i32
    %0 = arith.cmpi eq, %arg1, %c0_i32 : i32
    %1 = arith.extui %0 : i1 to i32
    %c0_i32_0 = arith.constant 0 : i32
    %2 = arith.cmpi ne, %1, %c0_i32_0 : i32
    scf.if %2 {
      %c0_45 = arith.constant 0 : index
      %c0_46 = arith.constant 0 : index
      %c0_47 = arith.constant 0 : index
      %107 = vector.load %arg2[%c0_45, %c0_46, %c0_47] : memref<1x16x128xf32, #tpu.memory_space<vmem>>, vector<1x16x128xf32>
      %108 = vector.shape_cast %107 : vector<1x16x128xf32> to vector<16x128xf32>
      %c0_48 = arith.constant 0 : index
      %c0_49 = arith.constant 0 : index
      %109 = vector.load %arg13[%c0_48, %c0_49] : memref<16x128xf32, #tpu.memory_space<vmem>>, vector<16x128xf32>
      tpu.vector_store %arg13[%c0_48, %c0_49], %108 {strides = array<i32>} : memref<16x128xf32, #tpu.memory_space<vmem>>, vector<16x128xf32>,
    } else {
    }
    %c0 = arith.constant 0 : index
    %c0_1 = arith.constant 0 : index
    %3 = vector.load %arg13[%c0, %c0_1] : memref<16x128xf32, #tpu.memory_space<vmem>>, vector<16x128xf32>
    %c0_2 = arith.constant 0 : index
    %c0_3 = arith.constant 0 : index
    %c0_4 = arith.constant 0 : index
    %4 = vector.load %arg8[%c0_2, %c0_3, %c0_4] : memref<1x8x128xf32, #tpu.memory_space<vmem>>, vector<1x8x128xf32>
    %5 = vector.shape_cast %4 : vector<1x8x128xf32> to vector<8x128xf32>
    %6 = vector.shape_cast %3 : vector<16x128xf32> to vector<1x16x128xf32>
    %7 = vector.shape_cast %6 : vector<1x16x128xf32> to vector<1x16x128xf32>
    %8 = vector.broadcast %7 : vector<1x16x128xf32> to vector<12x16x128xf32>
    %c0_5 = arith.constant 0 : index
    %c0_6 = arith.constant 0 : index
    %c0_7 = arith.constant 0 : index
    %c0_8 = arith.constant 0 : index
    %9 = vector.load %arg3[%c0_5, %c0_6, %c0_7, %c0_8] : memref<1x12x128x32xf32, #tpu.memory_space<vmem>>, vector<1x12x128x32xf32>
    %10 = vector.shape_cast %9 : vector<1x12x128x32xf32> to vector<12x128x32xf32>
    "tpu.trace_start"() <{level = 10 : i32, message = "gtc,gcd->gtd"}> : () -> ()
    %cst = arith.constant dense<0.000000e+00> : vector<12x16x32xf32>
    %11 = tpu.matmul %8, %10, %cst {dimension_numbers = #tpu.dot_dimension_numbers<[2], [1], [1], [2], [0, 0, 0, 1, 1, 2], [0], [0]>} : vector<12x16x128xf32>, vector<12x128x32xf32>, vector<12x16x32xf32> -> vector<12x16x32xf32>
    "tpu.trace_stop"() : () -> ()
    %12 = vector.extract_strided_slice %11 {offsets = [0, 0, 0], sizes = [4, 16, 32], strides = [1, 1, 1]} : vector<12x16x32xf32> to vector<4x16x32xf32>
    %13 = vector.extract_strided_slice %11 {offsets = [4, 0, 0], sizes = [4, 16, 32], strides = [1, 1, 1]} : vector<12x16x32xf32> to vector<4x16x32xf32>
    %14 = vector.extract_strided_slice %11 {offsets = [8, 0, 0], sizes = [4, 16, 32], strides = [1, 1, 1]} : vector<12x16x32xf32> to vector<4x16x32xf32>
    %15 = tpu.iota {dimensions = array<i32: 0>} : vector<16x16xi32>
    %16 = tpu.iota {dimensions = array<i32: 1>} : vector<16x16xi32>
    %17 = arith.cmpi sge, %15, %16 : vector<16x16xi32>
    %18 = vector.shape_cast %17 : vector<16x16xi1> to vector<1x16x16xi1>
    "tpu.trace_start"() <{level = 10 : i32, message = "htd,hsd->hts"}> : () -> ()
    %cst_9 = arith.constant dense<0.000000e+00> : vector<4x16x16xf32>
    %19 = tpu.matmul %12, %13, %cst_9 {dimension_numbers = #tpu.dot_dimension_numbers<[2], [2], [1], [1], [0, 0, 0, 1, 1, 1], [0], [0]>} : vector<4x16x32xf32>, vector<4x16x32xf32>, vector<4x16x16xf32> -> vector<4x16x16xf32>
    %cst_10 = arith.constant -1.000000e+30 : f32
    "tpu.trace_stop"() : () -> ()
    %20 = vector.shape_cast %18 : vector<1x16x16xi1> to vector<1x16x16xi1>
    %21 = vector.broadcast %20 : vector<1x16x16xi1> to vector<4x16x16xi1>
    %22 = vector.broadcast %cst_10 : f32 to vector<4x16x16xf32>
    %23 = arith.select %21, %19, %22 : vector<4x16x16xi1>, vector<4x16x16xf32>
    %cst_11 = arith.constant dense<0xFF800000> : vector<4x16xf32>
    %24 = vector.multi_reduction <maximumf>, %23, %cst_11 [2] : vector<4x16x16xf32> to vector<4x16xf32>
    %25 = vector.shape_cast %24 : vector<4x16xf32> to vector<4x16x1xf32>
    %26 = vector.broadcast %25 : vector<4x16x1xf32> to vector<4x16x16xf32>
    %27 = arith.subf %23, %26 : vector<4x16x16xf32>
    %28 = math.exp %27 : vector<4x16x16xf32>
    %cst_12 = arith.constant dense<0.000000e+00> : vector<4x16xf32>
    %29 = vector.multi_reduction <add>, %28, %cst_12 [2] : vector<4x16x16xf32> to vector<4x16xf32>
    %30 = vector.shape_cast %29 : vector<4x16xf32> to vector<4x16x1xf32>
    %31 = tpu.reciprocal %30 {approx = true} : vector<4x16x1xf32> -> vector<4x16x1xf32>
    %32 = vector.broadcast %31 : vector<4x16x1xf32> to vector<4x16x16xf32>
    %33 = arith.mulf %28, %32 : vector<4x16x16xf32>
    "tpu.trace_start"() <{level = 10 : i32, message = "hts,hsd->htd"}> : () -> ()
    %cst_13 = arith.constant dense<0.000000e+00> : vector<4x16x32xf32>
    %34 = tpu.matmul %33, %14, %cst_13 {dimension_numbers = #tpu.dot_dimension_numbers<[2], [1], [1], [2], [0, 0, 0, 1, 1, 2], [0], [0]>} : vector<4x16x16xf32>, vector<4x16x32xf32>, vector<4x16x32xf32> -> vector<4x16x32xf32>
    "tpu.trace_stop"() : () -> ()
    %c0_14 = arith.constant 0 : index
    %c0_15 = arith.constant 0 : index
    %c0_16 = arith.constant 0 : index
    %c0_17 = arith.constant 0 : index
    %35 = vector.load %arg4[%c0_14, %c0_15, %c0_16, %c0_17] : memref<1x4x32x128xf32, #tpu.memory_space<vmem>>, vector<1x4x32x128xf32>
    %36 = vector.shape_cast %35 : vector<1x4x32x128xf32> to vector<4x32x128xf32>
    "tpu.trace_start"() <{level = 10 : i32, message = "htd,hdc->htc"}> : () -> ()
    %cst_18 = arith.constant dense<0.000000e+00> : vector<4x16x128xf32>
    %37 = tpu.matmul %34, %36, %cst_18 {dimension_numbers = #tpu.dot_dimension_numbers<[2], [1], [1], [2], [0, 0, 0, 1, 1, 2], [0], [0]>} : vector<4x16x32xf32>, vector<4x32x128xf32>, vector<4x16x128xf32> -> vector<4x16x128xf32>
    "tpu.trace_stop"() : () -> ()
    %cst_19 = arith.constant dense<0.000000e+00> : vector<16x128xf32>
    %38 = vector.multi_reduction <add>, %37, %cst_19 [0] : vector<4x16x128xf32> to vector<16x128xf32>
    %39 = vector.extract_strided_slice %5 {offsets = [0, 0], sizes = [1, 128], strides = [1, 1]} : vector<8x128xf32> to vector<1x128xf32>
    %40 = vector.broadcast %39 : vector<1x128xf32> to vector<16x128xf32>
    %41 = arith.addf %38, %40 : vector<16x128xf32>
    %42 = arith.addf %3, %41 : vector<16x128xf32>
    %43 = vector.extract_strided_slice %5 {offsets = [2, 0], sizes = [1, 128], strides = [1, 1]} : vector<8x128xf32> to vector<1x128xf32>
    %44 = vector.extract_strided_slice %5 {offsets = [3, 0], sizes = [1, 128], strides = [1, 1]} : vector<8x128xf32> to vector<1x128xf32>
    %cst_20 = arith.constant dense<0.000000e+00> : vector<16xf32>
    %45 = vector.multi_reduction <add>, %42, %cst_20 [1] : vector<16x128xf32> to vector<16xf32>
    %46 = vector.shape_cast %45 : vector<16xf32> to vector<16x1xf32>
    %cst_21 = arith.constant 1.280000e+02 : f32
    %47 = vector.broadcast %cst_21 : f32 to vector<16x1xf32>
    %48 = arith.divf %46, %47 : vector<16x1xf32>
    %49 = vector.broadcast %48 : vector<16x1xf32> to vector<16x128xf32>
    %50 = arith.subf %42, %49 : vector<16x128xf32>
    %51 = arith.mulf %50, %50 : vector<16x128xf32>
    %cst_22 = arith.constant dense<0.000000e+00> : vector<16xf32>
    %52 = vector.multi_reduction <add>, %51, %cst_22 [1] : vector<16x128xf32> to vector<16xf32>
    %53 = vector.shape_cast %52 : vector<16xf32> to vector<16x1xf32>
    %cst_23 = arith.constant 1.280000e+02 : f32
    %54 = vector.broadcast %cst_23 : f32 to vector<16x1xf32>
    %55 = arith.divf %53, %54 : vector<16x1xf32>
    %cst_24 = arith.constant 9.99999974E-6 : f32
    %56 = vector.broadcast %cst_24 : f32 to vector<16x1xf32>
    %57 = arith.addf %55, %56 : vector<16x1xf32>
    %58 = math.rsqrt %57 : vector<16x1xf32>
    %59 = vector.broadcast %58 : vector<16x1xf32> to vector<16x128xf32>
    %60 = arith.mulf %50, %59 : vector<16x128xf32>
    %61 = vector.broadcast %43 : vector<1x128xf32> to vector<16x128xf32>
    %62 = arith.mulf %60, %61 : vector<16x128xf32>
    %63 = vector.broadcast %44 : vector<1x128xf32> to vector<16x128xf32>
    %64 = arith.addf %62, %63 : vector<16x128xf32>
    %c0_25 = arith.constant 0 : index
    %c0_26 = arith.constant 0 : index
    %c0_27 = arith.constant 0 : index
    %65 = vector.load %arg5[%c0_25, %c0_26, %c0_27] : memref<1x128x512xf32, #tpu.memory_space<vmem>>, vector<1x128x512xf32>
    %66 = vector.shape_cast %65 : vector<1x128x512xf32> to vector<128x512xf32>
    %cst_28 = arith.constant dense<0.000000e+00> : vector<16x512xf32>
    %67 = tpu.matmul %64, %66, %cst_28 {dimension_numbers = #tpu.dot_dimension_numbers<[1], [0], [0], [1], [0, 0, 1, 1], [], []>} : vector<16x128xf32>, vector<128x512xf32>, vector<16x512xf32> -> vector<16x512xf32>
    %c0_29 = arith.constant 0 : index
    %c0_30 = arith.constant 0 : index
    %c0_31 = arith.constant 0 : index
    %68 = vector.load %arg6[%c0_29, %c0_30, %c0_31] : memref<1x1x512xf32, #tpu.memory_space<vmem>>, vector<1x1x512xf32>
    %69 = vector.shape_cast %68 : vector<1x1x512xf32> to vector<1x512xf32>
    %70 = vector.broadcast %69 : vector<1x512xf32> to vector<16x512xf32>
    %71 = arith.addf %67, %70 : vector<16x512xf32>
    %cst_32 = arith.constant 0.000000e+00 : f32
    %72 = vector.broadcast %cst_32 : f32 to vector<16x512xf32>
    %73 = arith.maximumf %71, %72 : vector<16x512xf32>
    %c0_33 = arith.constant 0 : index
    %c0_34 = arith.constant 0 : index
    %c0_35 = arith.constant 0 : index
    %74 = vector.load %arg7[%c0_33, %c0_34, %c0_35] : memref<1x512x128xf32, #tpu.memory_space<vmem>>, vector<1x512x128xf32>
    %75 = vector.shape_cast %74 : vector<1x512x128xf32> to vector<512x128xf32>
    %cst_36 = arith.constant dense<0.000000e+00> : vector<16x128xf32>
    %76 = tpu.matmul %73, %75, %cst_36 {dimension_numbers = #tpu.dot_dimension_numbers<[1], [0], [0], [1], [0, 0, 1, 1], [], []>} : vector<16x512xf32>, vector<512x128xf32>, vector<16x128xf32> -> vector<16x128xf32>
    %77 = vector.extract_strided_slice %5 {offsets = [1, 0], sizes = [1, 128], strides = [1, 1]} : vector<8x128xf32> to vector<1x128xf32>
    %78 = vector.broadcast %77 : vector<1x128xf32> to vector<16x128xf32>
    %79 = arith.addf %76, %78 : vector<16x128xf32>
    %80 = arith.addf %64, %79 : vector<16x128xf32>
    %81 = vector.extract_strided_slice %5 {offsets = [4, 0], sizes = [1, 128], strides = [1, 1]} : vector<8x128xf32> to vector<1x128xf32>
    %82 = vector.extract_strided_slice %5 {offsets = [5, 0], sizes = [1, 128], strides = [1, 1]} : vector<8x128xf32> to vector<1x128xf32>
    %cst_37 = arith.constant dense<0.000000e+00> : vector<16xf32>
    %83 = vector.multi_reduction <add>, %80, %cst_37 [1] : vector<16x128xf32> to vector<16xf32>
    %84 = vector.shape_cast %83 : vector<16xf32> to vector<16x1xf32>
    %cst_38 = arith.constant 1.280000e+02 : f32
    %85 = vector.broadcast %cst_38 : f32 to vector<16x1xf32>
    %86 = arith.divf %84, %85 : vector<16x1xf32>
    %87 = vector.broadcast %86 : vector<16x1xf32> to vector<16x128xf32>
    %88 = arith.subf %80, %87 : vector<16x128xf32>
    %89 = arith.mulf %88, %88 : vector<16x128xf32>
    %cst_39 = arith.constant dense<0.000000e+00> : vector<16xf32>
    %90 = vector.multi_reduction <add>, %89, %cst_39 [1] : vector<16x128xf32> to vector<16xf32>
    %91 = vector.shape_cast %90 : vector<16xf32> to vector<16x1xf32>
    %cst_40 = arith.constant 1.280000e+02 : f32
    %92 = vector.broadcast %cst_40 : f32 to vector<16x1xf32>
    %93 = arith.divf %91, %92 : vector<16x1xf32>
    %cst_41 = arith.constant 9.99999974E-6 : f32
    %94 = vector.broadcast %cst_41 : f32 to vector<16x1xf32>
    %95 = arith.addf %93, %94 : vector<16x1xf32>
    %96 = math.rsqrt %95 : vector<16x1xf32>
    %97 = vector.broadcast %96 : vector<16x1xf32> to vector<16x128xf32>
    %98 = arith.mulf %88, %97 : vector<16x128xf32>
    %99 = vector.broadcast %81 : vector<1x128xf32> to vector<16x128xf32>
    %100 = arith.mulf %98, %99 : vector<16x128xf32>
    %101 = vector.broadcast %82 : vector<1x128xf32> to vector<16x128xf32>
    %102 = arith.addf %100, %101 : vector<16x128xf32>
    %c0_42 = arith.constant 0 : index
    %c0_43 = arith.constant 0 : index
    %103 = vector.load %arg13[%c0_42, %c0_43] : memref<16x128xf32, #tpu.memory_space<vmem>>, vector<16x128xf32>
    tpu.vector_store %arg13[%c0_42, %c0_43], %102 {strides = array<i32>} : memref<16x128xf32, #tpu.memory_space<vmem>>, vector<16x128xf32>,
    %c1_i32 = arith.constant 1 : i32
    %104 = arith.cmpi eq, %arg1, %c1_i32 : i32
    %105 = arith.extui %104 : i1 to i32
    %c0_i32_44 = arith.constant 0 : i32
    %106 = arith.cmpi ne, %105, %c0_i32_44 : i32
    scf.if %106 {
      %c0_45 = arith.constant 0 : index
      %c0_46 = arith.constant 0 : index
      %107 = vector.load %arg9[%c0_45, %c0_46] : memref<2x128xf32, #tpu.memory_space<vmem>>, vector<2x128xf32>
      %108 = vector.extract_strided_slice %107 {offsets = [0, 0], sizes = [1, 128], strides = [1, 1]} : vector<2x128xf32> to vector<1x128xf32>
      %109 = vector.extract_strided_slice %107 {offsets = [1, 0], sizes = [1, 128], strides = [1, 1]} : vector<2x128xf32> to vector<1x128xf32>
      %cst_47 = arith.constant dense<0.000000e+00> : vector<16xf32>
      %110 = vector.multi_reduction <add>, %102, %cst_47 [1] : vector<16x128xf32> to vector<16xf32>
      %111 = vector.shape_cast %110 : vector<16xf32> to vector<16x1xf32>
      %cst_48 = arith.constant 1.280000e+02 : f32
      %112 = vector.broadcast %cst_48 : f32 to vector<16x1xf32>
      %113 = arith.divf %111, %112 : vector<16x1xf32>
      %114 = vector.broadcast %113 : vector<16x1xf32> to vector<16x128xf32>
      %115 = arith.subf %102, %114 : vector<16x128xf32>
      %116 = arith.mulf %115, %115 : vector<16x128xf32>
      %cst_49 = arith.constant dense<0.000000e+00> : vector<16xf32>
      %117 = vector.multi_reduction <add>, %116, %cst_49 [1] : vector<16x128xf32> to vector<16xf32>
      %118 = vector.shape_cast %117 : vector<16xf32> to vector<16x1xf32>
      %cst_50 = arith.constant 1.280000e+02 : f32
      %119 = vector.broadcast %cst_50 : f32 to vector<16x1xf32>
      %120 = arith.divf %118, %119 : vector<16x1xf32>
      %cst_51 = arith.constant 9.99999974E-6 : f32
      %121 = vector.broadcast %cst_51 : f32 to vector<16x1xf32>
      %122 = arith.addf %120, %121 : vector<16x1xf32>
      %123 = math.rsqrt %122 : vector<16x1xf32>
      %124 = vector.broadcast %123 : vector<16x1xf32> to vector<16x128xf32>
      %125 = arith.mulf %115, %124 : vector<16x128xf32>
      %126 = vector.broadcast %108 : vector<1x128xf32> to vector<16x128xf32>
      %127 = arith.mulf %125, %126 : vector<16x128xf32>
      %128 = vector.broadcast %109 : vector<1x128xf32> to vector<16x128xf32>
      %129 = arith.addf %127, %128 : vector<16x128xf32>
      %c0_52 = arith.constant 0 : index
      %c0_53 = arith.constant 0 : index
      %130 = vector.load %arg10[%c0_52, %c0_53] : memref<128x128xf32, #tpu.memory_space<vmem>>, vector<128x128xf32>
      %cst_54 = arith.constant dense<0.000000e+00> : vector<16x128xf32>
      %131 = tpu.matmul %129, %130, %cst_54 {dimension_numbers = #tpu.dot_dimension_numbers<[1], [0], [0], [1], [0, 0, 1, 1], [], []>} : vector<16x128xf32>, vector<128x128xf32>, vector<16x128xf32> -> vector<16x128xf32>
      %c0_55 = arith.constant 0 : index
      %c0_56 = arith.constant 0 : index
      %132 = vector.load %arg11[%c0_55, %c0_56] : memref<1x128xf32, #tpu.memory_space<vmem>>, vector<1x128xf32>
      %133 = vector.broadcast %132 : vector<1x128xf32> to vector<16x128xf32>
      %134 = arith.addf %131, %133 : vector<16x128xf32>
      %c0_57 = arith.constant 0 : index
      %c0_58 = arith.constant 0 : index
      %c0_59 = arith.constant 0 : index
      %135 = vector.load %arg12[%c0_57, %c0_58, %c0_59] : memref<1x16x128xf32, #tpu.memory_space<vmem>>, vector<1x16x128xf32>
      %136 = vector.shape_cast %135 : vector<1x16x128xf32> to vector<16x128xf32>
      %137 = vector.shape_cast %134 : vector<16x128xf32> to vector<1x16x128xf32>
      tpu.vector_store %arg12[%c0_57, %c0_58, %c0_59], %137 {strides = array<i32>} : memref<1x16x128xf32, #tpu.memory_space<vmem>>, vector<1x16x128xf32>,
    } else {
    }
    return
  }
  func.func @transform_0(%arg0: i32, %arg1: i32) -> (i32, i32, i32) {
    %c0_i32 = arith.constant 0 : i32
    %c0_i32_0 = arith.constant 0 : i32
    %c0_i32_1 = arith.constant 0 : i32
    return %arg0, %c0_i32, %c0_i32_0 : i32, i32, i32
  }
  func.func @transform_1(%arg0: i32, %arg1: i32) -> (i32, i32, i32, i32) {
    %c0_i32 = arith.constant 0 : i32
    %c0_i32_0 = arith.constant 0 : i32
    %c0_i32_1 = arith.constant 0 : i32
    %c0_i32_2 = arith.constant 0 : i32
    return %arg1, %c0_i32, %c0_i32_0, %c0_i32_1 : i32, i32, i32, i32
  }
  func.func @transform_2(%arg0: i32, %arg1: i32) -> (i32, i32, i32, i32) {
    %c0_i32 = arith.constant 0 : i32
    %c0_i32_0 = arith.constant 0 : i32
    %c0_i32_1 = arith.constant 0 : i32
    %c0_i32_2 = arith.constant 0 : i32
    return %arg1, %c0_i32, %c0_i32_0, %c0_i32_1 : i32, i32, i32, i32
  }
  func.func @transform_3(%arg0: i32, %arg1: i32) -> (i32, i32, i32) {
    %c0_i32 = arith.constant 0 : i32
    %c0_i32_0 = arith.constant 0 : i32
    %c0_i32_1 = arith.constant 0 : i32
    return %arg1, %c0_i32, %c0_i32_0 : i32, i32, i32
  }
  func.func @transform_4(%arg0: i32, %arg1: i32) -> (i32, i32, i32) {
    %c0_i32 = arith.constant 0 : i32
    %c0_i32_0 = arith.constant 0 : i32
    %c0_i32_1 = arith.constant 0 : i32
    return %arg1, %c0_i32, %c0_i32_0 : i32, i32, i32
  }
  func.func @transform_5(%arg0: i32, %arg1: i32) -> (i32, i32, i32) {
    %c0_i32 = arith.constant 0 : i32
    %c0_i32_0 = arith.constant 0 : i32
    %c0_i32_1 = arith.constant 0 : i32
    return %arg1, %c0_i32, %c0_i32_0 : i32, i32, i32
  }
  func.func @transform_6(%arg0: i32, %arg1: i32) -> (i32, i32, i32) {
    %c0_i32 = arith.constant 0 : i32
    %c0_i32_0 = arith.constant 0 : i32
    %c0_i32_1 = arith.constant 0 : i32
    return %arg1, %c0_i32, %c0_i32_0 : i32, i32, i32
  }
  func.func @transform_7(%arg0: i32, %arg1: i32) -> (i32, i32) {
    %c0_i32 = arith.constant 0 : i32
    %c0_i32_0 = arith.constant 0 : i32
    %c0_i32_1 = arith.constant 0 : i32
    return %c0_i32, %c0_i32_0 : i32, i32
  }
  func.func @transform_8(%arg0: i32, %arg1: i32) -> (i32, i32) {
    %c0_i32 = arith.constant 0 : i32
    %c0_i32_0 = arith.constant 0 : i32
    %c0_i32_1 = arith.constant 0 : i32
    return %c0_i32, %c0_i32_0 : i32, i32
  }
  func.func @transform_9(%arg0: i32, %arg1: i32) -> (i32, i32) {
    %c0_i32 = arith.constant 0 : i32
    %c0_i32_0 = arith.constant 0 : i32
    %c0_i32_1 = arith.constant 0 : i32
    return %c0_i32, %c0_i32_0 : i32, i32
  }
  func.func @transform_10(%arg0: i32, %arg1: i32) -> (i32, i32, i32) {
    %c0_i32 = arith.constant 0 : i32
    %c0_i32_0 = arith.constant 0 : i32
    %c0_i32_1 = arith.constant 0 : i32
    return %arg0, %c0_i32, %c0_i32_0 : i32, i32, i32
  }
}

</mosaic_0001>

<bundles_post_ra>
// kernel: gpt_forward.1
= control target key start
LH: loop header
LB: loop body
LE: loop exit
PB: predicated region body
PF: predicated region fallthrough
CT: control target
= control target key end

     0   :  { %s6180_s0 = inlined_call_operand.vmem [shape: f32[2,16,128], index: 0, kind: input, shape index: {}]   ;;  %s6181_s1 = inlined_call_operand.vmem [shape: f32[2,12,128,32], index: 1, kind: input, shape index: {}]   ;;  %s6182_s2 = inlined_call_operand.vmem [shape: f32[2,4,32,128], index: 2, kind: input, shape index: {}]   ;;  %s6183_s3 = inlined_call_operand.vmem [shape: f32[2,128,512], index: 3, kind: input, shape index: {}]   ;;  %s6184_s4 = inlined_call_operand.vmem [shape: f32[2,1,512], index: 4, kind: input, shape index: {}]   ;;  %s6185_s5 = inlined_call_operand.vmem [shape: f32[2,512,128], index: 5, kind: input, shape index: {}]   ;;  %s6186_s6 = inlined_call_operand.vmem [shape: f32[2,8,128], index: 6, kind: input, shape index: {}]   ;;  %s6187_s7 = inlined_call_operand.vmem [shape: f32[2,128], index: 7, kind: input, shape index: {}]   ;;  %s6188_s8 = inlined_call_operand.vmem [shape: f32[128,128], index: 8, kind: input, shape index: {}]   ;;  %s6189_s9 = inlined_call_operand.vmem [shape: f32[1,128], index: 9, kind: input, shape index: {}]   ;;  %s6190_s10 = inlined_call_operand.hbm [shape: f32[2,16,128], index: 10, kind: output, shape index: {}]  }
   0x1   :  { %6204 = sst [smem:[#allocation17_spill]] %s6180_s0 }
   0x2   :  { %6205 = sst [smem:[#allocation18_spill]] %s6190_s10 }
   0x3   :  { %15 = vsyncpa [#allocation4], 0 }
   0x4   :  { %17 = vsyncpa [#allocation4 + $0x1], 0  ;;  %s5440_s13 = smov 0   ;;  %s5442_s14 = smov 0  }
   0x5   :  { %s5444_s15 = smov 0   ;;  %s5446_s16 = smov 0  }
   0x6   :  { %s5448_s17 = smov 0   ;;  %s5450_s18 = smov 0  }
   0x7   :  { %s5452_s19 = smov 0   ;;  %s5454_s20 = smov 0  }
   0x8 LB: > { %6206 = sst [smem:[#allocation6_spill]] %s5351_s13  ;;  %s3559_s21 = sadd.s32 4294967295, %s5379_s20   ;;  %s5379_s20 = sphi %s5454_s20, %s23_s20   ;;  %s5375_s19 = sphi %s5452_s19, %s6236_s19   ;;  %s5371_s18 = sphi %s5450_s18, %s6235_s18   ;;  %s5367_s17 = sphi %s5448_s17, %s6234_s17   ;;  %s5363_s16 = sphi %s5446_s16, %s6233_s16   ;;  %s5359_s15 = sphi %s5444_s15, %s6232_s15   ;;  %s5355_s14 = sphi %s5442_s14, %s6231_s14   ;;  %s5351_s13 = sphi %s5440_s13, %s6230_s13  }
   0x9   : > { %6207 = sst [smem:[#allocation7_spill]] %s5355_s14  ;;  %s3560_s22 = sadd.s32 4294967294, %s5379_s20  }
   0xa   : > { %6208 = sst [smem:[#allocation8_spill]] %s5359_s15  ;;  %s32_s23 = sadd.s32 1, %s5371_s18 }
   0xb   : > { %6209 = sst [smem:[#allocation9_spill]] %s5371_s18  ;;  %p33_p0 = scmp.ge.s32.totalorder %s32_s23, 2 }
   0xc   : > { %6210 = sst [smem:[#allocation10_spill]] %s5375_s19  ;;  %s35_s24 = sadd.s32 1, %s5375_s19 }
   0xd   : > { %6211 = sst [smem:[#allocation11_spill]] %s5379_s20  ;;  %p297_p1 = scmp.ne.s32.totalorder %s5359_s15, %s5355_s14 }
   0xe   : > { %p298_p2 = scmp.eq.s32.totalorder %s3559_s21, 3  ;;  %s6238_s23 = smov (%p33_p0, %s32_s23), 0 }
   0xf   : > { %6212 = sst [smem:[#allocation12_spill]] %s6238_s23  ;;  %s6240_s24 = smov (!%p33_p0, %s35_s24), %s5375_s19 }
  0x10   : > { %p5489_p3 = por %p298_p2, %p297_p1  ;;  %p303_p4 = scmp.ne.s32.totalorder %s5355_s14, %s5351_s13 }
  0x11   : > { %p37_p5 = scmp.ge.s32.totalorder %s6240_s24, 2  ;;  %p304_p6 = scmp.eq.s32.totalorder %s3560_s22, 3 }
  0x12   : > { %s6213_s25 = scalar_select %p5489_p3, 1, 0 }
  0x13   : > { %p3563_p7 = scmp.ge.s32.totalorder %s5379_s20, 1  ;;  %p385_p8 = scmp.lt.s32.totalorder %s5379_s20, 5 }
  0x14   : > { %6214 = sst [smem:[#allocation13_spill]] %s6213_s25  ;;  %s6242_s24 = smov (%p37_p5, %s6240_s24), 0 }
  0x15   : > { %6215 = sst [smem:[#allocation14_spill]] %s6242_s24  ;;  %p5499_p9 = por %p304_p6, %p303_p4 }
  0x16   : > { %p386_p10 = pnand %p3563_p7, %p385_p8  ;;  %s284_s27 = ssub.s32 %s5375_s19, %s6242_s24 }
  0x17   : > { %s6216_s26 = scalar_select %p5499_p9, 1, 0 }
  0x18   : > { %s287_s28 = sadd.s32 1, %s5359_s15  ;;  %p285_p11 = scmp.eq.s32.totalorder %s284_s27, 0 }
  0x19   : > { %6217 = sst [smem:[#allocation15_spill]] %s6216_s26  ;;  %389 = sbr.rel (%p386_p10) target bundleno = 2988 (0xbac), region = 60 }
  0x1a   : > { %s5507_s29 = scalar_select %p285_p11, %s5359_s15, %s287_s28  }
  0x1b   : > { %s6199_s30 = sand.u32 (!%p386_p10), 1, %s5355_s14   ;;  %p451_p12 = scmp.lt.s32.totalorder (!%p386_p10), %s5367_s17, 1 }
  0x1c   : > { %6218 = sst [smem:[#allocation16_spill]] %s5507_s29  ;;  %s3564_s11 = sshll.u32 (!%p386_p10), %s6199_s30, 4 }
  0x1d   : > { %p456_p13 = scmp.lt.s32.totalorder (!%p386_p10), %s5363_s16, 1  ;;  %s6219_s0 = sld [smem:[#allocation17_spill]] (!%p386_p10) }
  0x1e   : > { %s5549_s10 = scalar_lea.vmem (!%p386_p10), [#allocation3], %s3564_s11  ;;  %p3576_p0 = scmp.ne.s32.totalorder (!%p386_p10), %s5363_s16, 0 }
  0x20   : > { %s452_s12 = scalar_select %p451_p12, %s5367_s17, 1 }
  0x21   : > { %s457_s21 = scalar_select %p456_p13, %s5363_s16, 1 }
  0x22   : > { %s3616_s22 = sshll.u32 %s452_s12, 4 }
  0x23   : > { %s455_s27 = scalar_lea.vmem %s6219_s0, %s3616_s22  ;;  %s5164_s28 = smul.u32 1536, %s457_s21 }
  0x24   : > { %s3617_s19 = sshll.u32 %s457_s21, 7  ;;  %s3618_s18 = sshll.u32 %s457_s21, 9  ;;  %v488_v0 = vld [vmem:[%s455_s27] sm:$0xff] (!%p3576_p0)  ;;  %v489_v1 = vld [vmem:[%s455_s27 + $0x8] sm:$0xff] (!%p3576_p0) }
  0x25   : > { %s5522_s26 = scalar_lea.vmem %s6181_s1, %s5164_s28  ;;  %s5527_s30 = scalar_lea.vmem %s6182_s2, %s3617_s19  ;;  %490 = vst [vmem:[#allocation2] sm:$0xff] (!%p3576_p0), %v488_v0  ;;  %491 = vst [vmem:[#allocation2 + $0x8] sm:$0xff] (!%p3576_p0), %v489_v1 }
  0x26   : > { %s5532_s12 = scalar_lea.vmem %s6183_s3, %s3618_s18  ;;  %s3572_s23 = sshll.u32 %s457_s21, 2 }
  0x27   : > { %s5537_s0 = scalar_lea.vmem %s6184_s4, %s3572_s23  ;;  %s5542_s29 = scalar_lea.vmem %s6185_s5, %s3618_s18 }
  0x28   : > { %s3575_s28 = sshll.u32 %s457_s21, 3  ;;  %487 = sbr.rel (%p3576_p0) target bundleno = 47 (0x2f), region = 64 }
  0x29   : > { %s5547_s20 = scalar_lea.vmem %s6186_s6, %s3575_s28 }
  0x2f PF: > { %v495_v2 = vld [vmem:[%s5522_s26] sm:$0xff]  ;;  %v496_v3 = vld [vmem:[%s5522_s26 + $0x8] sm:$0xff]  ;;  %v497_v4 = vld [vmem:[%s5522_s26 + $0x10] sm:$0xff]  ;;  %vm1594_vm0 = vcmask 261120   ;;  %vm1955_vm3 = vcmask 130048   ;;  %p3609_p1 = scmp.ne.s32.totalorder %s5363_s16, 1 }
  0x30   : > { %v4542_v5 = vpack.c.bf16 %v496_v3, %v495_v2  ;;  %v498_v6 = vld [vmem:[%s5522_s26 + $0x18] sm:$0xff]  ;;  %v511_v7 = vld [vmem:[%s5522_s26 + $0x80] sm:$0xff]  ;;  %v512_v8 = vld [vmem:[%s5522_s26 + $0x88] sm:$0xff] }
  0x31   : > { %v4546_v9 = vpack.c.bf16 %v498_v6, %v497_v4  ;;  %v4574_v10 = vpack.c.bf16 %v512_v8, %v511_v7  ;;  %v499_v11 = vld [vmem:[%s5522_s26 + $0x20] sm:$0xff]  ;;  %v500_v12 = vld [vmem:[%s5522_s26 + $0x28] sm:$0xff]  ;;  %v513_v13 = vld [vmem:[%s5522_s26 + $0x90] sm:$0xff] }
  0x32   : > { %4543 = vmatprep.subr.bf16.mxu0 %v4542_v5  ;;  %v514_v14 = vld [vmem:[%s5522_s26 + $0x98] sm:$0xff]  ;;  %v515_v16 = vld [vmem:[%s5522_s26 + $0xa0] sm:$0xff]  ;;  %v516_v17 = vld [vmem:[%s5522_s26 + $0xa8] sm:$0xff]  ;;  %v4550_v18 = vpack.c.bf16 %v500_v12, %v499_v11 }
  0x33   : > { %4545 = vmatpush3.bf16.msra.mxu0 %v4542_v5  ;;  %4575 = vmatprep.subr.bf16.mxu1 %v4574_v10  ;;  %v4578_v15 = vpack.c.bf16 %v514_v14, %v513_v13  ;;  %v501_v19 = vld [vmem:[%s5522_s26 + $0x30] sm:$0xff]  ;;  %v502_v20 = vld [vmem:[%s5522_s26 + $0x38] sm:$0xff]  ;;  %v4582_v21 = vpack.c.bf16 %v516_v17, %v515_v16  ;;  %v5568_v25 = vld [vmem:[#allocation2] sm:$0xff] }
  0x34   : > { %4547 = vmatprep.subr.bf16.mxu0 %v4546_v9  ;;  %4577 = vmatpush3.bf16.msra.mxu1 %v4574_v10  ;;  %v517_v22 = vld [vmem:[%s5522_s26 + $0xb0] sm:$0xff]  ;;  %v518_v23 = vld [vmem:[%s5522_s26 + $0xb8] sm:$0xff]  ;;  %v4554_v24 = vpack.c.bf16 %v502_v20, %v501_v19  ;;  %v503_v26 = vld [vmem:[%s5522_s26 + $0x40] sm:$0xff] }
  0x35   : > { %4579 = vmatprep.subr.bf16.mxu1 %v4578_v15  ;;  %v504_v27 = vld [vmem:[%s5522_s26 + $0x48] sm:$0xff]  ;;  %v4586_v28 = vpack.c.bf16 %v518_v23, %v517_v22  ;;  %4019 = vmatprep.mubr.f32.mxu0 %v5568_v25  ;;  %v519_v29 = vld [vmem:[%s5522_s26 + $0xc0] sm:$0xff]  ;;  %v505_v32 = vld [vmem:[%s5522_s26 + $0x50] sm:$0xff] }
  0x36   : > { %v520_v30 = vld [vmem:[%s5522_s26 + $0xc8] sm:$0xff]  ;;  %4054 = vmatprep.mubr.f32.mxu1 %v5568_v25  ;;  %v4558_v31 = vpack.c.bf16 %v504_v27, %v503_v26  ;;  %v506_v33 = vld [vmem:[%s5522_s26 + $0x58] sm:$0xff]  ;;  %v521_v35 = vld [vmem:[%s5522_s26 + $0xd0] sm:$0xff] }
  0x37   : > { %4549 = vmatpush3.bf16.msra.mxu0 %v4546_v9  ;;  %v4590_v34 = vpack.c.bf16 %v520_v30, %v519_v29  ;;  %v522_v36 = vld [vmem:[%s5522_s26 + $0xd8] sm:$0xff]  ;;  %v4562_v37 = vpack.c.bf16 %v506_v33, %v505_v32  ;;  %v507_v38 = vld [vmem:[%s5522_s26 + $0x60] sm:$0xff]  ;;  %v508_v39 = vld [vmem:[%s5522_s26 + $0x68] sm:$0xff] }
  0x38   : > { %4551 = vmatprep.subr.bf16.mxu0 %v4550_v18  ;;  %4581 = vmatpush3.bf16.msra.mxu1 %v4578_v15  ;;  %v4594_v40 = vpack.c.bf16 %v522_v36, %v521_v35  ;;  %v523_v41 = vld [vmem:[%s5522_s26 + $0xe0] sm:$0xff]  ;;  %v524_v42 = vld [vmem:[%s5522_s26 + $0xe8] sm:$0xff]  ;;  %v4566_v43 = vpack.c.bf16 %v508_v39, %v507_v38  ;;  %v509_v44 = vld [vmem:[%s5522_s26 + $0x70] sm:$0xff] }
  0x39   : > { %4583 = vmatprep.subr.bf16.mxu1 %v4582_v21  ;;  %v510_v45 = vld [vmem:[%s5522_s26 + $0x78] sm:$0xff]  ;;  %v4598_v46 = vpack.c.bf16 %v524_v42, %v523_v41  ;;  %v525_v47 = vld [vmem:[%s5522_s26 + $0xf0] sm:$0xff]  ;;  %v527_v50 = vld [vmem:[%s5522_s26 + $0x100] sm:$0xff] }
  0x3a   : > { %v526_v48 = vld [vmem:[%s5522_s26 + $0xf8] sm:$0xff]  ;;  %v4570_v49 = vpack.c.bf16 %v510_v45, %v509_v44  ;;  %v528_v51 = vld [vmem:[%s5522_s26 + $0x108] sm:$0xff]  ;;  %v543_v53 = vld [vmem:[%s5522_s26 + $0x180] sm:$0xff] }
  0x3b   : > { %4553 = vmatpush3.bf16.msra.mxu0 %v4550_v18  ;;  %v4602_v52 = vpack.c.bf16 %v526_v48, %v525_v47  ;;  %v544_v54 = vld [vmem:[%s5522_s26 + $0x188] sm:$0xff]  ;;  %v4606_v55 = vpack.c.bf16 %v528_v51, %v527_v50  ;;  %v529_v56 = vld [vmem:[%s5522_s26 + $0x110] sm:$0xff]  ;;  %v530_v57 = vld [vmem:[%s5522_s26 + $0x118] sm:$0xff] }
  0x3c   : > { %4555 = vmatprep.subr.bf16.mxu0 %v4554_v24  ;;  %4585 = vmatpush3.bf16.msra.mxu1 %v4582_v21  ;;  %v4638_v58 = vpack.c.bf16 %v544_v54, %v543_v53  ;;  %v545_v59 = vld [vmem:[%s5522_s26 + $0x190] sm:$0xff]  ;;  %v546_v60 = vld [vmem:[%s5522_s26 + $0x198] sm:$0xff]  ;;  %v5596_v61 = vld [vmem:[#allocation2 + $0x8] sm:$0xff]  ;;  %v4610_v62 = vpack.c.bf16 %v530_v57, %v529_v56 }
  0x3d   : > { %4587 = vmatprep.subr.bf16.mxu1 %v4586_v28  ;;  %v531_v63 = vld [vmem:[%s5522_s26 + $0x120] sm:$0xff]  ;;  %v532_v0 = vld [vmem:[%s5522_s26 + $0x128] sm:$0xff]  ;;  %v4642_v1 = vpack.c.bf16 %v546_v60, %v545_v59  ;;  %v533_v5 = vld [vmem:[%s5522_s26 + $0x130] sm:$0xff] }
  0x3e   : > { %v547_v2 = vld [vmem:[%s5522_s26 + $0x1a0] sm:$0xff]  ;;  %v548_v3 = vld [vmem:[%s5522_s26 + $0x1a8] sm:$0xff]  ;;  %v4614_v4 = vpack.c.bf16 %v532_v0, %v531_v63  ;;  %v534_v6 = vld [vmem:[%s5522_s26 + $0x138] sm:$0xff] }
  0x3f   : > { %4557 = vmatpush3.bf16.msra.mxu0 %v4554_v24  ;;  %v4646_v7 = vpack.c.bf16 %v548_v3, %v547_v2  ;;  %v549_v8 = vld [vmem:[%s5522_s26 + $0x1b0] sm:$0xff]  ;;  %v550_v9 = vld [vmem:[%s5522_s26 + $0x1b8] sm:$0xff]  ;;  %v4618_v10 = vpack.c.bf16 %v534_v6, %v533_v5  ;;  %v535_v11 = vld [vmem:[%s5522_s26 + $0x140] sm:$0xff] }
  0x40   : > { %4559 = vmatprep.subr.bf16.mxu0 %v4558_v31  ;;  %4589 = vmatpush3.bf16.msra.mxu1 %v4586_v28  ;;  %v536_v12 = vld [vmem:[%s5522_s26 + $0x148] sm:$0xff]  ;;  %v4650_v13 = vpack.c.bf16 %v550_v9, %v549_v8  ;;  %v551_v14 = vld [vmem:[%s5522_s26 + $0x1c0] sm:$0xff]  ;;  %v537_v17 = vld [vmem:[%s5522_s26 + $0x150] sm:$0xff] }
  0x41   : > { %4591 = vmatprep.subr.bf16.mxu1 %v4590_v34  ;;  %v552_v15 = vld [vmem:[%s5522_s26 + $0x1c8] sm:$0xff]  ;;  %v4622_v16 = vpack.c.bf16 %v536_v12, %v535_v11  ;;  %v538_v18 = vld [vmem:[%s5522_s26 + $0x158] sm:$0xff]  ;;  %v553_v20 = vld [vmem:[%s5522_s26 + $0x1d0] sm:$0xff] }
  0x42   : > { %v4654_v19 = vpack.c.bf16 %v552_v15, %v551_v14  ;;  %v554_v21 = vld [vmem:[%s5522_s26 + $0x1d8] sm:$0xff]  ;;  %v4626_v22 = vpack.c.bf16 %v538_v18, %v537_v17  ;;  %v539_v23 = vld [vmem:[%s5522_s26 + $0x160] sm:$0xff]  ;;  %v540_v24 = vld [vmem:[%s5522_s26 + $0x168] sm:$0xff] }
  0x43   : > { %4561 = vmatpush3.bf16.msra.mxu0 %v4558_v31  ;;  %v4658_v26 = vpack.c.bf16 %v554_v21, %v553_v20  ;;  %v555_v27 = vld [vmem:[%s5522_s26 + $0x1e0] sm:$0xff]  ;;  %v556_v28 = vld [vmem:[%s5522_s26 + $0x1e8] sm:$0xff]  ;;  %v4630_v29 = vpack.c.bf16 %v540_v24, %v539_v23  ;;  %v541_v30 = vld [vmem:[%s5522_s26 + $0x170] sm:$0xff] }
  0x44   : > { %4563 = vmatprep.subr.bf16.mxu0 %v4562_v37  ;;  %4593 = vmatpush3.bf16.msra.mxu1 %v4590_v34  ;;  %v542_v31 = vld [vmem:[%s5522_s26 + $0x178] sm:$0xff]  ;;  %v4662_v32 = vpack.c.bf16 %v556_v28, %v555_v27  ;;  %v557_v33 = vld [vmem:[%s5522_s26 + $0x1f0] sm:$0xff]  ;;  %v559_v36 = vld [vmem:[%s5522_s26 + $0x200] sm:$0xff] }
  0x45   : > { %4595 = vmatprep.subr.bf16.mxu1 %v4594_v40  ;;  %v558_v34 = vld [vmem:[%s5522_s26 + $0x1f8] sm:$0xff]  ;;  %v4634_v35 = vpack.c.bf16 %v542_v31, %v541_v30  ;;  %v575_v39 = vld [vmem:[%s5522_s26 + $0x280] sm:$0xff]  ;;  %v561_v42 = vld [vmem:[%s5522_s26 + $0x210] sm:$0xff] }
  0x46   : > { %v4666_v38 = vpack.c.bf16 %v558_v34, %v557_v33  ;;  %v577_v45 = vld [vmem:[%s5522_s26 + $0x290] sm:$0xff]  ;;  %v563_v48 = vld [vmem:[%s5522_s26 + $0x220] sm:$0xff]  ;;  %vm5740_vm1 = vmpackc.low %vm1594_vm0, %vm1594_vm0 }
  0x47   : > { %4565 = vmatpush3.bf16.msra.mxu0 %v4562_v37  ;;  %v560_v37 = vld [vmem:[%s5522_s26 + $0x208] sm:$0xff]  ;;  %v579_v51 = vld [vmem:[%s5522_s26 + $0x2a0] sm:$0xff]  ;;  %v565_v54 = vld [vmem:[%s5522_s26 + $0x230] sm:$0xff] }
  0x48   : > { %4567 = vmatprep.subr.bf16.mxu0 %v4566_v43  ;;  %4597 = vmatpush3.bf16.msra.mxu1 %v4594_v40  ;;  %v576_v40 = vld [vmem:[%s5522_s26 + $0x288] sm:$0xff]  ;;  %v4670_v41 = vpack.c.bf16 %v560_v37, %v559_v36  ;;  %v581_v57 = vld [vmem:[%s5522_s26 + $0x2b0] sm:$0xff]  ;;  %v567_v60 = vld [vmem:[%s5522_s26 + $0x240] sm:$0xff] }
  0x49   : > { %4599 = vmatprep.subr.bf16.mxu1 %v4598_v46  ;;  %v4702_v44 = vpack.c.bf16 %v576_v40, %v575_v39  ;;  %v583_v0 = vld [vmem:[%s5522_s26 + $0x2c0] sm:$0xff]  ;;  %v569_v3 = vld [vmem:[%s5522_s26 + $0x250] sm:$0xff] }
  0x4a   : > { %v585_v6 = vld [vmem:[%s5522_s26 + $0x2d0] sm:$0xff]  ;;  %v571_v9 = vld [vmem:[%s5522_s26 + $0x260] sm:$0xff] }
  0x4b   : > { %4569 = vmatpush3.bf16.msra.mxu0 %v4566_v43  ;;  %v562_v43 = vld [vmem:[%s5522_s26 + $0x218] sm:$0xff]  ;;  %v587_v12 = vld [vmem:[%s5522_s26 + $0x2e0] sm:$0xff]  ;;  %v573_v15 = vld [vmem:[%s5522_s26 + $0x270] sm:$0xff] }
  0x4c   : > { %4571 = vmatprep.subr.bf16.mxu0 %v4570_v49  ;;  %4601 = vmatpush3.bf16.msra.mxu1 %v4598_v46  ;;  %v578_v46 = vld [vmem:[%s5522_s26 + $0x298] sm:$0xff]  ;;  %v4674_v47 = vpack.c.bf16 %v562_v43, %v561_v42  ;;  %v589_v18 = vld [vmem:[%s5522_s26 + $0x2f0] sm:$0xff]  ;;  %v591_v21 = vld [vmem:[%s5522_s26 + $0x300] sm:$0xff] }
  0x4d   : > { %4603 = vmatprep.subr.bf16.mxu1 %v4602_v52  ;;  %v4706_v50 = vpack.c.bf16 %v578_v46, %v577_v45  ;;  %v607_v24 = vld [vmem:[%s5522_s26 + $0x380] sm:$0xff]  ;;  %v593_v28 = vld [vmem:[%s5522_s26 + $0x310] sm:$0xff] }
  0x4e   : > { %v609_v31 = vld [vmem:[%s5522_s26 + $0x390] sm:$0xff]  ;;  %v595_v34 = vld [vmem:[%s5522_s26 + $0x320] sm:$0xff] }
  0x4f   : > { %4573 = vmatpush3.bf16.msra.mxu0 %v4570_v49  ;;  %v564_v49 = vld [vmem:[%s5522_s26 + $0x228] sm:$0xff]  ;;  %v611_v37 = vld [vmem:[%s5522_s26 + $0x3a0] sm:$0xff]  ;;  %v597_v40 = vld [vmem:[%s5522_s26 + $0x330] sm:$0xff] }
  0x50   : > { %4607 = vmatprep.subr.bf16.mxu0 %v4606_v55  ;;  %4605 = vmatpush3.bf16.msra.mxu1 %v4602_v52  ;;  %v580_v52 = vld [vmem:[%s5522_s26 + $0x2a8] sm:$0xff]  ;;  %v4678_v53 = vpack.c.bf16 %v564_v49, %v563_v48  ;;  %v613_v43 = vld [vmem:[%s5522_s26 + $0x3b0] sm:$0xff]  ;;  %v599_v46 = vld [vmem:[%s5522_s26 + $0x340] sm:$0xff] }
  0x51   : > { %4639 = vmatprep.subr.bf16.mxu1 %v4638_v58  ;;  %v4710_v56 = vpack.c.bf16 %v580_v52, %v579_v51  ;;  %v615_v49 = vld [vmem:[%s5522_s26 + $0x3c0] sm:$0xff]  ;;  %v601_v52 = vld [vmem:[%s5522_s26 + $0x350] sm:$0xff] }
  0x52   : > { %4020 = vmatmul.mubr.f32.vlgmr.msra.gmra.mrb[0].mxu0 %v5596_v61 }
  0x53   : > { %4609 = vmatpush3.bf16.msra.mxu0 %v4606_v55  ;;  %4055 = vmatmul.mubr.f32.vlgmr.msra.gmra.mrb[0].mxu1 %v5596_v61  ;;  %v566_v55 = vld [vmem:[%s5522_s26 + $0x238] sm:$0xff] }
  0x54   : > { %4611 = vmatprep.subr.bf16.mxu0 %v4610_v62  ;;  %4641 = vmatpush3.bf16.msra.mxu1 %v4638_v58  ;;  %v582_v58 = vld [vmem:[%s5522_s26 + $0x2b8] sm:$0xff]  ;;  %v4682_v59 = vpack.c.bf16 %v566_v55, %v565_v54  ;;  %v617_v55 = vld [vmem:[%s5522_s26 + $0x3d0] sm:$0xff] }
  0x55   : > { %4643 = vmatprep.subr.bf16.mxu1 %v4642_v1  ;;  %4089 = vmatprep.mubr.f32.mxu0 %v5568_v25  ;;  %v4714_v63 = vpack.c.bf16 %v582_v58, %v581_v57  ;;  %v603_v58 = vld [vmem:[%s5522_s26 + $0x360] sm:$0xff] }
  0x56   : > { %4124 = vmatprep.mubr.f32.mxu1 %v5568_v25 }
  0x57   : > { %4613 = vmatpush3.bf16.msra.mxu0 %v4610_v62  ;;  %v568_v62 = vld [vmem:[%s5522_s26 + $0x248] sm:$0xff] }
  0x58   : > { %4615 = vmatprep.subr.bf16.mxu0 %v4614_v4  ;;  %4645 = vmatpush3.bf16.msra.mxu1 %v4642_v1  ;;  %v584_v1 = vld [vmem:[%s5522_s26 + $0x2c8] sm:$0xff]  ;;  %v4686_v2 = vpack.c.bf16 %v568_v62, %v567_v60  ;;  %v619_v62 = vld [vmem:[%s5522_s26 + $0x3e0] sm:$0xff] }
  0x59   : > { %4647 = vmatprep.subr.bf16.mxu1 %v4646_v7  ;;  %v4718_v5 = vpack.c.bf16 %v584_v1, %v583_v0  ;;  %v605_v1 = vld [vmem:[%s5522_s26 + $0x370] sm:$0xff] }
  0x5b   : > { %4617 = vmatpush3.bf16.msra.mxu0 %v4614_v4  ;;  %v570_v4 = vld [vmem:[%s5522_s26 + $0x258] sm:$0xff] }
  0x5c   : > { %4619 = vmatprep.subr.bf16.mxu0 %v4618_v10  ;;  %4649 = vmatpush3.bf16.msra.mxu1 %v4646_v7  ;;  %v586_v7 = vld [vmem:[%s5522_s26 + $0x2d8] sm:$0xff]  ;;  %v4690_v8 = vpack.c.bf16 %v570_v4, %v569_v3  ;;  %v621_v4 = vld [vmem:[%s5522_s26 + $0x3f0] sm:$0xff] }
  0x5d   : > { %4651 = vmatprep.subr.bf16.mxu1 %v4650_v13  ;;  %v4722_v11 = vpack.c.bf16 %v586_v7, %v585_v6 }
  0x5f   : > { %4621 = vmatpush3.bf16.msra.mxu0 %v4618_v10  ;;  %v572_v10 = vld [vmem:[%s5522_s26 + $0x268] sm:$0xff] }
  0x60   : > { %4623 = vmatprep.subr.bf16.mxu0 %v4622_v16  ;;  %4653 = vmatpush3.bf16.msra.mxu1 %v4650_v13  ;;  %v588_v13 = vld [vmem:[%s5522_s26 + $0x2e8] sm:$0xff]  ;;  %v4694_v14 = vpack.c.bf16 %v572_v10, %v571_v9 }
  0x61   : > { %4655 = vmatprep.subr.bf16.mxu1 %v4654_v19  ;;  %v4726_v17 = vpack.c.bf16 %v588_v13, %v587_v12  ;;  %v640_v9 = vld [vmem:[%s5522_s26 + $0x488] sm:$0xff]  ;;  %v642_v12 = vld [vmem:[%s5522_s26 + $0x498] sm:$0xff] }
  0x63   : > { %4625 = vmatpush3.bf16.msra.mxu0 %v4622_v16  ;;  %v574_v16 = vld [vmem:[%s5522_s26 + $0x278] sm:$0xff] }
  0x64   : > { %4627 = vmatprep.subr.bf16.mxu0 %v4626_v22  ;;  %4657 = vmatpush3.bf16.msra.mxu1 %v4654_v19  ;;  %v590_v19 = vld [vmem:[%s5522_s26 + $0x2f8] sm:$0xff]  ;;  %v4698_v20 = vpack.c.bf16 %v574_v16, %v573_v15  ;;  %v644_v15 = vld [vmem:[%s5522_s26 + $0x4a8] sm:$0xff] }
  0x65   : > { %4659 = vmatprep.subr.bf16.mxu1 %v4658_v26  ;;  %v4730_v23 = vpack.c.bf16 %v590_v19, %v589_v18  ;;  %v646_v18 = vld [vmem:[%s5522_s26 + $0x4b8] sm:$0xff] }
  0x67   : > { %4629 = vmatpush3.bf16.msra.mxu0 %v4626_v22  ;;  %v592_v22 = vld [vmem:[%s5522_s26 + $0x308] sm:$0xff] }
  0x68   : > { %4631 = vmatprep.subr.bf16.mxu0 %v4630_v29  ;;  %4661 = vmatpush3.bf16.msra.mxu1 %v4658_v26  ;;  %v608_v26 = vld [vmem:[%s5522_s26 + $0x388] sm:$0xff]  ;;  %v4734_v27 = vpack.c.bf16 %v592_v22, %v591_v21 }
  0x69   : > { %4663 = vmatprep.subr.bf16.mxu1 %v4662_v32  ;;  %v4766_v30 = vpack.c.bf16 %v608_v26, %v607_v24  ;;  %v648_v21 = vld [vmem:[%s5522_s26 + $0x4c8] sm:$0xff]  ;;  %v650_v24 = vld [vmem:[%s5522_s26 + $0x4d8] sm:$0xff] }
  0x6b   : > { %4633 = vmatpush3.bf16.msra.mxu0 %v4630_v29  ;;  %v594_v29 = vld [vmem:[%s5522_s26 + $0x318] sm:$0xff] }
  0x6c   : > { %4635 = vmatprep.subr.bf16.mxu0 %v4634_v35  ;;  %4665 = vmatpush3.bf16.msra.mxu1 %v4662_v32  ;;  %v610_v32 = vld [vmem:[%s5522_s26 + $0x398] sm:$0xff]  ;;  %v4738_v33 = vpack.c.bf16 %v594_v29, %v593_v28  ;;  %v652_v28 = vld [vmem:[%s5522_s26 + $0x4e8] sm:$0xff] }
  0x6d   : > { %4667 = vmatprep.subr.bf16.mxu1 %v4666_v38  ;;  %v4770_v36 = vpack.c.bf16 %v610_v32, %v609_v31  ;;  %v654_v31 = vld [vmem:[%s5522_s26 + $0x4f8] sm:$0xff] }
  0x6f   : > { %4637 = vmatpush3.bf16.msra.mxu0 %v4634_v35  ;;  %v596_v35 = vld [vmem:[%s5522_s26 + $0x328] sm:$0xff] }
  0x70   : > { %4671 = vmatprep.subr.bf16.mxu0 %v4670_v41  ;;  %4669 = vmatpush3.bf16.msra.mxu1 %v4666_v38  ;;  %v612_v38 = vld [vmem:[%s5522_s26 + $0x3a8] sm:$0xff]  ;;  %v4742_v39 = vpack.c.bf16 %v596_v35, %v595_v34 }
  0x71   : > { %4703 = vmatprep.subr.bf16.mxu1 %v4702_v44  ;;  %v4774_v42 = vpack.c.bf16 %v612_v38, %v611_v37  ;;  %v672_v34 = vld [vmem:[%s5522_s26 + $0x588] sm:$0xff]  ;;  %v674_v37 = vld [vmem:[%s5522_s26 + $0x598] sm:$0xff] }
  0x72   : > { %4090 = vmatmul.mubr.f32.vlgmr.msra.gmra.mrb[2].mxu0 %v5596_v61 }
  0x73   : > { %4673 = vmatpush3.bf16.msra.mxu0 %v4670_v41  ;;  %4125 = vmatmul.mubr.f32.vlgmr.msra.gmra.mrb[2].mxu1 %v5596_v61  ;;  %v598_v41 = vld [vmem:[%s5522_s26 + $0x338] sm:$0xff] }
  0x74   : > { %4675 = vmatprep.subr.bf16.mxu0 %v4674_v47  ;;  %4705 = vmatpush3.bf16.msra.mxu1 %v4702_v44  ;;  %v614_v44 = vld [vmem:[%s5522_s26 + $0x3b8] sm:$0xff]  ;;  %v4746_v45 = vpack.c.bf16 %v598_v41, %v597_v40  ;;  %v676_v40 = vld [vmem:[%s5522_s26 + $0x5a8] sm:$0xff] }
  0x75   : > { %4707 = vmatprep.subr.bf16.mxu1 %v4706_v50  ;;  %4159 = vmatprep.mubr.f32.mxu0 %v5568_v25  ;;  %v4778_v48 = vpack.c.bf16 %v614_v44, %v613_v43  ;;  %v678_v43 = vld [vmem:[%s5522_s26 + $0x5b8] sm:$0xff] }
  0x76   : > { %4194 = vmatprep.mubr.f32.mxu1 %v5568_v25 }
  0x77   : > { %4677 = vmatpush3.bf16.msra.mxu0 %v4674_v47  ;;  %v600_v47 = vld [vmem:[%s5522_s26 + $0x348] sm:$0xff] }
  0x78   : > { %4679 = vmatprep.subr.bf16.mxu0 %v4678_v53  ;;  %4709 = vmatpush3.bf16.msra.mxu1 %v4706_v50  ;;  %v616_v50 = vld [vmem:[%s5522_s26 + $0x3c8] sm:$0xff]  ;;  %v4750_v51 = vpack.c.bf16 %v600_v47, %v599_v46 }
  0x79   : > { %4711 = vmatprep.subr.bf16.mxu1 %v4710_v56  ;;  %v4782_v54 = vpack.c.bf16 %v616_v50, %v615_v49  ;;  %v680_v46 = vld [vmem:[%s5522_s26 + $0x5c8] sm:$0xff]  ;;  %v682_v49 = vld [vmem:[%s5522_s26 + $0x5d8] sm:$0xff] }
  0x7b   : > { %4681 = vmatpush3.bf16.msra.mxu0 %v4678_v53  ;;  %v602_v53 = vld [vmem:[%s5522_s26 + $0x358] sm:$0xff] }
  0x7c   : > { %4683 = vmatprep.subr.bf16.mxu0 %v4682_v59  ;;  %4713 = vmatpush3.bf16.msra.mxu1 %v4710_v56  ;;  %v618_v56 = vld [vmem:[%s5522_s26 + $0x3d8] sm:$0xff]  ;;  %v4754_v57 = vpack.c.bf16 %v602_v53, %v601_v52  ;;  %v684_v52 = vld [vmem:[%s5522_s26 + $0x5e8] sm:$0xff] }
  0x7d   : > { %4715 = vmatprep.subr.bf16.mxu1 %v4714_v63  ;;  %v4786_v60 = vpack.c.bf16 %v618_v56, %v617_v55  ;;  %v686_v55 = vld [vmem:[%s5522_s26 + $0x5f8] sm:$0xff] }
  0x7f   : > { %4685 = vmatpush3.bf16.msra.mxu0 %v4682_v59  ;;  %v604_v59 = vld [vmem:[%s5522_s26 + $0x368] sm:$0xff] }
  0x80   : > { %4687 = vmatprep.subr.bf16.mxu0 %v4686_v2  ;;  %4717 = vmatpush3.bf16.msra.mxu1 %v4714_v63  ;;  %v620_v63 = vld [vmem:[%s5522_s26 + $0x3e8] sm:$0xff]  ;;  %v4758_v0 = vpack.c.bf16 %v604_v59, %v603_v58 }
  0x81   : > { %4719 = vmatprep.subr.bf16.mxu1 %v4718_v5  ;;  %v4790_v3 = vpack.c.bf16 %v620_v63, %v619_v62 }
  0x83   : > { %4689 = vmatpush3.bf16.msra.mxu0 %v4686_v2  ;;  %v606_v2 = vld [vmem:[%s5522_s26 + $0x378] sm:$0xff] }
  0x84   : > { %4691 = vmatprep.subr.bf16.mxu0 %v4690_v8  ;;  %4721 = vmatpush3.bf16.msra.mxu1 %v4718_v5  ;;  %v622_v5 = vld [vmem:[%s5522_s26 + $0x3f8] sm:$0xff]  ;;  %v4762_v6 = vpack.c.bf16 %v606_v2, %v605_v1 }
  0x85   : > { %4723 = vmatprep.subr.bf16.mxu1 %v4722_v11  ;;  %v4794_v7 = vpack.c.bf16 %v622_v5, %v621_v4  ;;  %v670_v4 = vld [vmem:[%s5522_s26 + $0x578] sm:$0xff] }
  0x87   : > { %4693 = vmatpush3.bf16.msra.mxu0 %v4690_v8  ;;  %v639_v8 = vld [vmem:[%s5522_s26 + $0x480] sm:$0xff] }
  0x88   : > { %4695 = vmatprep.subr.bf16.mxu0 %v4694_v14  ;;  %4725 = vmatpush3.bf16.msra.mxu1 %v4722_v11  ;;  %v4830_v10 = vpack.c.bf16 %v640_v9, %v639_v8  ;;  %v641_v11 = vld [vmem:[%s5522_s26 + $0x490] sm:$0xff] }
  0x89   : > { %4727 = vmatprep.subr.bf16.mxu1 %v4726_v17  ;;  %v4834_v13 = vpack.c.bf16 %v642_v12, %v641_v11 }
  0x8b   : > { %4697 = vmatpush3.bf16.msra.mxu0 %v4694_v14  ;;  %v643_v14 = vld [vmem:[%s5522_s26 + $0x4a0] sm:$0xff] }
  0x8c   : > { %4699 = vmatprep.subr.bf16.mxu0 %v4698_v20  ;;  %4729 = vmatpush3.bf16.msra.mxu1 %v4726_v17  ;;  %v4838_v16 = vpack.c.bf16 %v644_v15, %v643_v14  ;;  %v645_v17 = vld [vmem:[%s5522_s26 + $0x4b0] sm:$0xff] }
  0x8d   : > { %4731 = vmatprep.subr.bf16.mxu1 %v4730_v23  ;;  %v4842_v19 = vpack.c.bf16 %v646_v18, %v645_v17 }
  0x8f   : > { %4701 = vmatpush3.bf16.msra.mxu0 %v4698_v20  ;;  %v647_v20 = vld [vmem:[%s5522_s26 + $0x4c0] sm:$0xff] }
  0x90   : > { %4735 = vmatprep.subr.bf16.mxu0 %v4734_v27  ;;  %4733 = vmatpush3.bf16.msra.mxu1 %v4730_v23  ;;  %v4846_v22 = vpack.c.bf16 %v648_v21, %v647_v20  ;;  %v649_v23 = vld [vmem:[%s5522_s26 + $0x4d0] sm:$0xff]  ;;  %v623_v21 = vld [vmem:[%s5522_s26 + $0x400] sm:$0xff] }
  0x91   : > { %4767 = vmatprep.subr.bf16.mxu1 %v4766_v30  ;;  %v4850_v26 = vpack.c.bf16 %v650_v24, %v649_v23  ;;  %v625_v23 = vld [vmem:[%s5522_s26 + $0x410] sm:$0xff] }
  0x92   : > { %4160 = vmatmul.mubr.f32.vlgmr.msra.gmra.mrb[4].mxu0 %v5596_v61 }
  0x93   : > { %4737 = vmatpush3.bf16.msra.mxu0 %v4734_v27  ;;  %4195 = vmatmul.mubr.f32.vlgmr.msra.gmra.mrb[4].mxu1 %v5596_v61  ;;  %v651_v27 = vld [vmem:[%s5522_s26 + $0x4e0] sm:$0xff] }
  0x94   : > { %4739 = vmatprep.subr.bf16.mxu0 %v4738_v33  ;;  %4769 = vmatpush3.bf16.msra.mxu1 %v4766_v30  ;;  %v4854_v29 = vpack.c.bf16 %v652_v28, %v651_v27  ;;  %v653_v30 = vld [vmem:[%s5522_s26 + $0x4f0] sm:$0xff]  ;;  %v627_v28 = vld [vmem:[%s5522_s26 + $0x420] sm:$0xff] }
  0x95   : > { %4771 = vmatprep.subr.bf16.mxu1 %v4770_v36  ;;  %4229 = vmatprep.mubr.f32.mxu0 %v5568_v25  ;;  %v4858_v32 = vpack.c.bf16 %v654_v31, %v653_v30  ;;  %v629_v31 = vld [vmem:[%s5522_s26 + $0x430] sm:$0xff] }
  0x96   : > { %4264 = vmatprep.mubr.f32.mxu1 %v5568_v25 }
  0x97   : > { %4741 = vmatpush3.bf16.msra.mxu0 %v4738_v33  ;;  %v671_v33 = vld [vmem:[%s5522_s26 + $0x580] sm:$0xff] }
  0x98   : > { %4743 = vmatprep.subr.bf16.mxu0 %v4742_v39  ;;  %4773 = vmatpush3.bf16.msra.mxu1 %v4770_v36  ;;  %v4894_v35 = vpack.c.bf16 %v672_v34, %v671_v33  ;;  %v673_v36 = vld [vmem:[%s5522_s26 + $0x590] sm:$0xff]  ;;  %v631_v34 = vld [vmem:[%s5522_s26 + $0x440] sm:$0xff] }
  0x99   : > { %4775 = vmatprep.subr.bf16.mxu1 %v4774_v42  ;;  %v4898_v38 = vpack.c.bf16 %v674_v37, %v673_v36  ;;  %v633_v37 = vld [vmem:[%s5522_s26 + $0x450] sm:$0xff] }
  0x9b   : > { %4745 = vmatpush3.bf16.msra.mxu0 %v4742_v39  ;;  %v675_v39 = vld [vmem:[%s5522_s26 + $0x5a0] sm:$0xff] }
  0x9c   : > { %4747 = vmatprep.subr.bf16.mxu0 %v4746_v45  ;;  %4777 = vmatpush3.bf16.msra.mxu1 %v4774_v42  ;;  %v4902_v41 = vpack.c.bf16 %v676_v40, %v675_v39  ;;  %v677_v42 = vld [vmem:[%s5522_s26 + $0x5b0] sm:$0xff]  ;;  %v635_v40 = vld [vmem:[%s5522_s26 + $0x460] sm:$0xff] }
  0x9d   : > { %4779 = vmatprep.subr.bf16.mxu1 %v4778_v48  ;;  %v4906_v44 = vpack.c.bf16 %v678_v43, %v677_v42  ;;  %v637_v43 = vld [vmem:[%s5522_s26 + $0x470] sm:$0xff] }
  0x9f   : > { %4749 = vmatpush3.bf16.msra.mxu0 %v4746_v45  ;;  %v679_v45 = vld [vmem:[%s5522_s26 + $0x5c0] sm:$0xff] }
  0xa0   : > { %4751 = vmatprep.subr.bf16.mxu0 %v4750_v51  ;;  %4781 = vmatpush3.bf16.msra.mxu1 %v4778_v48  ;;  %v4910_v47 = vpack.c.bf16 %v680_v46, %v679_v45  ;;  %v681_v48 = vld [vmem:[%s5522_s26 + $0x5d0] sm:$0xff]  ;;  %v655_v46 = vld [vmem:[%s5522_s26 + $0x500] sm:$0xff] }
  0xa1   : > { %4783 = vmatprep.subr.bf16.mxu1 %v4782_v54  ;;  %v4914_v50 = vpack.c.bf16 %v682_v49, %v681_v48  ;;  %v657_v49 = vld [vmem:[%s5522_s26 + $0x510] sm:$0xff] }
  0xa3   : > { %4753 = vmatpush3.bf16.msra.mxu0 %v4750_v51  ;;  %v683_v51 = vld [vmem:[%s5522_s26 + $0x5e0] sm:$0xff] }
  0xa4   : > { %4755 = vmatprep.subr.bf16.mxu0 %v4754_v57  ;;  %4785 = vmatpush3.bf16.msra.mxu1 %v4782_v54  ;;  %v4918_v53 = vpack.c.bf16 %v684_v52, %v683_v51  ;;  %v685_v54 = vld [vmem:[%s5522_s26 + $0x5f0] sm:$0xff]  ;;  %v659_v52 = vld [vmem:[%s5522_s26 + $0x520] sm:$0xff] }
  0xa5   : > { %4787 = vmatprep.subr.bf16.mxu1 %v4786_v60  ;;  %v4922_v56 = vpack.c.bf16 %v686_v55, %v685_v54  ;;  %v661_v55 = vld [vmem:[%s5522_s26 + $0x530] sm:$0xff] }
  0xa7   : > { %4757 = vmatpush3.bf16.msra.mxu0 %v4754_v57 }
  0xa8   : > { %4759 = vmatprep.subr.bf16.mxu0 %v4758_v0  ;;  %4789 = vmatpush3.bf16.msra.mxu1 %v4786_v60 }
  0xa9   : > { %4791 = vmatprep.subr.bf16.mxu1 %v4790_v3 }
  0xab   : > { %4761 = vmatpush3.bf16.msra.mxu0 %v4758_v0 }
  0xac   : > { %4763 = vmatprep.subr.bf16.mxu0 %v4762_v6  ;;  %4793 = vmatpush3.bf16.msra.mxu1 %v4790_v3 }
  0xad   : > { %4795 = vmatprep.subr.bf16.mxu1 %v4794_v7 }
  0xaf   : > { %4765 = vmatpush3.bf16.msra.mxu0 %v4762_v6 }
  0xb0   : > { %4797 = vmatpush3.bf16.msra.mxu1 %v4794_v7 }
  0xb1   : > { %4831 = vmatprep.subr.bf16.mxu1 %v4830_v10 }
  0xb2   : > { %4230 = vmatmul.mubr.f32.vlgmr.msra.gmra.mrb[6].mxu0 %v5596_v61 }
  0xb3   : > { %4265 = vmatmul.mubr.f32.vlgmr.msra.gmra.mrb[6].mxu1 %v5596_v61  ;;  %4299 = vmatprep.mubr.f32.mxu0 %v5568_v25 }
  0xb4   : > { %4833 = vmatpush3.bf16.msra.mxu1 %v4830_v10  ;;  %4334 = vmatprep.mubr.f32.mxu1 %v5568_v25 }
  0xb5   : > { %4835 = vmatprep.subr.bf16.mxu1 %v4834_v13 }
  0xb8   : > { %4837 = vmatpush3.bf16.msra.mxu1 %v4834_v13 }
  0xb9   : > { %4839 = vmatprep.subr.bf16.mxu1 %v4838_v16 }
  0xbc   : > { %4841 = vmatpush3.bf16.msra.mxu1 %v4838_v16 }
  0xbd   : > { %4843 = vmatprep.subr.bf16.mxu1 %v4842_v19 }
  0xc0   : > { %4845 = vmatpush3.bf16.msra.mxu1 %v4842_v19 }
  0xc1   : > { %4847 = vmatprep.subr.bf16.mxu1 %v4846_v22 }
  0xc4   : > { %4849 = vmatpush3.bf16.msra.mxu1 %v4846_v22  ;;  %v624_v22 = vld [vmem:[%s5522_s26 + $0x408] sm:$0xff] }
  0xc5   : > { %4851 = vmatprep.subr.bf16.mxu1 %v4850_v26  ;;  %v4798_v24 = vpack.c.bf16 %v624_v22, %v623_v21 }
  0xc7   : > { %4799 = vmatprep.subr.bf16.mxu0 %v4798_v24 }
  0xc8   : > { %4853 = vmatpush3.bf16.msra.mxu1 %v4850_v26  ;;  %v626_v26 = vld [vmem:[%s5522_s26 + $0x418] sm:$0xff]  ;;  %4801 = vmatpush3.bf16.msra.mxu0 %v4798_v24 }
  0xc9   : > { %4855 = vmatprep.subr.bf16.mxu1 %v4854_v29  ;;  %v4802_v27 = vpack.c.bf16 %v626_v26, %v625_v23 }
  0xcb   : > { %4803 = vmatprep.subr.bf16.mxu0 %v4802_v27 }
  0xcc   : > { %4857 = vmatpush3.bf16.msra.mxu1 %v4854_v29  ;;  %v628_v29 = vld [vmem:[%s5522_s26 + $0x428] sm:$0xff]  ;;  %4805 = vmatpush3.bf16.msra.mxu0 %v4802_v27 }
  0xcd   : > { %4859 = vmatprep.subr.bf16.mxu1 %v4858_v32  ;;  %v4806_v30 = vpack.c.bf16 %v628_v29, %v627_v28 }
  0xcf   : > { %4807 = vmatprep.subr.bf16.mxu0 %v4806_v30 }
  0xd0   : > { %4861 = vmatpush3.bf16.msra.mxu1 %v4858_v32  ;;  %v630_v32 = vld [vmem:[%s5522_s26 + $0x438] sm:$0xff]  ;;  %4809 = vmatpush3.bf16.msra.mxu0 %v4806_v30 }
  0xd1   : > { %4895 = vmatprep.subr.bf16.mxu1 %v4894_v35  ;;  %v4810_v33 = vpack.c.bf16 %v630_v32, %v629_v31 }
  0xd3   : > { %4335 = vmatmul.mubr.f32.vlgmr.msra.gmra.mrb[8].mxu1 %v5596_v61  ;;  %4811 = vmatprep.subr.bf16.mxu0 %v4810_v33 }
  0xd4   : > { %4897 = vmatpush3.bf16.msra.mxu1 %v4894_v35  ;;  %4404 = vmatprep.mubr.f32.mxu1 %v5568_v25  ;;  %v632_v35 = vld [vmem:[%s5522_s26 + $0x448] sm:$0xff] }
  0xd5   : > { %4899 = vmatprep.subr.bf16.mxu1 %v4898_v38  ;;  %v4814_v36 = vpack.c.bf16 %v632_v35, %v631_v34  ;;  %4813 = vmatpush3.bf16.msra.mxu0 %v4810_v33 }
  0xd7   : > { %4815 = vmatprep.subr.bf16.mxu0 %v4814_v36 }
  0xd8   : > { %4901 = vmatpush3.bf16.msra.mxu1 %v4898_v38  ;;  %v634_v38 = vld [vmem:[%s5522_s26 + $0x458] sm:$0xff] }
  0xd9   : > { %4903 = vmatprep.subr.bf16.mxu1 %v4902_v41  ;;  %v4818_v39 = vpack.c.bf16 %v634_v38, %v633_v37  ;;  %4817 = vmatpush3.bf16.msra.mxu0 %v4814_v36 }
  0xdb   : > { %4819 = vmatprep.subr.bf16.mxu0 %v4818_v39 }
  0xdc   : > { %4905 = vmatpush3.bf16.msra.mxu1 %v4902_v41  ;;  %v636_v41 = vld [vmem:[%s5522_s26 + $0x468] sm:$0xff] }
  0xdd   : > { %4907 = vmatprep.subr.bf16.mxu1 %v4906_v44  ;;  %v4822_v42 = vpack.c.bf16 %v636_v41, %v635_v40  ;;  %4821 = vmatpush3.bf16.msra.mxu0 %v4818_v39 }
  0xdf   : > { %4823 = vmatprep.subr.bf16.mxu0 %v4822_v42 }
  0xe0   : > { %4909 = vmatpush3.bf16.msra.mxu1 %v4906_v44  ;;  %v638_v44 = vld [vmem:[%s5522_s26 + $0x478] sm:$0xff] }
  0xe1   : > { %4911 = vmatprep.subr.bf16.mxu1 %v4910_v47  ;;  %v4826_v45 = vpack.c.bf16 %v638_v44, %v637_v43  ;;  %4825 = vmatpush3.bf16.msra.mxu0 %v4822_v42 }
  0xe3   : > { %4827 = vmatprep.subr.bf16.mxu0 %v4826_v45 }
  0xe4   : > { %4913 = vmatpush3.bf16.msra.mxu1 %v4910_v47  ;;  %v656_v47 = vld [vmem:[%s5522_s26 + $0x508] sm:$0xff] }
  0xe5   : > { %4915 = vmatprep.subr.bf16.mxu1 %v4914_v50  ;;  %v4862_v48 = vpack.c.bf16 %v656_v47, %v655_v46  ;;  %4829 = vmatpush3.bf16.msra.mxu0 %v4826_v45 }
  0xe7   : > { %4863 = vmatprep.subr.bf16.mxu0 %v4862_v48 }
  0xe8   : > { %4917 = vmatpush3.bf16.msra.mxu1 %v4914_v50  ;;  %v658_v50 = vld [vmem:[%s5522_s26 + $0x518] sm:$0xff]  ;;  %4300 = vmatmul.mubr.f32.vlgmr.msra.gmra.mrb[8].mxu0 %v5596_v61 }
  0xe9   : > { %4919 = vmatprep.subr.bf16.mxu1 %v4918_v53  ;;  %v4866_v51 = vpack.c.bf16 %v658_v50, %v657_v49  ;;  %4865 = vmatpush3.bf16.msra.mxu0 %v4862_v48 }
  0xea   : > { %4369 = vmatprep.mubr.f32.mxu0 %v5568_v25 }
  0xeb   : > { %4867 = vmatprep.subr.bf16.mxu0 %v4866_v51 }
  0xec   : > { %4921 = vmatpush3.bf16.msra.mxu1 %v4918_v53  ;;  %v660_v53 = vld [vmem:[%s5522_s26 + $0x528] sm:$0xff] }
  0xed   : > { %4923 = vmatprep.subr.bf16.mxu1 %v4922_v56  ;;  %v4870_v54 = vpack.c.bf16 %v660_v53, %v659_v52  ;;  %4869 = vmatpush3.bf16.msra.mxu0 %v4866_v51 }
  0xef   : > { %4871 = vmatprep.subr.bf16.mxu0 %v4870_v54 }
  0xf0   : > { %4925 = vmatpush3.bf16.msra.mxu1 %v4922_v56  ;;  %v662_v56 = vld [vmem:[%s5522_s26 + $0x538] sm:$0xff] }
  0xf1   : > { %4873 = vmatpush3.bf16.msra.mxu0 %v4870_v54 }
  0xf3   : > { %4405 = vmatmul.mubr.f32.vlgmr.msra.gmra.mrb[10].mxu1 %v5596_v61 }
 0x125   : > { %v4021_v57 = vpop.f32.mrb[0].mxu0 }
 0x126   : > { %v753_v58 = vpop.f32.mrb[1].mxu0  ;;  %v4056_v59 = vpop.f32.mrb[0].mxu1 }
 0x127   : > { %4411 = vmatprep.mubr.msk.f32.mxu1 %vm1594_vm0, %v753_v58  ;;  %v828_v60 = vpop.f32.mrb[1].mxu1  ;;  %v663_v58 = vld [vmem:[%s5522_s26 + $0x540] sm:$0xff] }
 0x145   : > { %v4091_v62 = vpop.f32.mrb[2].mxu0 }
 0x146   : > { %v903_v63 = vpop.f32.mrb[3].mxu0  ;;  %v4126_v0 = vpop.f32.mrb[2].mxu1 }
 0x147   : > { %v978_v1 = vpop.f32.mrb[3].mxu1 }
 0x165   : > { %v4161_v2 = vpop.f32.mrb[4].mxu0 }
 0x166   : > { %v1053_v3 = vpop.f32.mrb[5].mxu0  ;;  %v4196_v5 = vpop.f32.mrb[4].mxu1 }
 0x167   : > { %v4926_v6 = vpack.c.bf16 %v4161_v2, %v1053_v3  ;;  %v1128_v7 = vpop.f32.mrb[5].mxu1  ;;  %v669_v3 = vld [vmem:[%s5522_s26 + $0x570] sm:$0xff] }
 0x168   : > { %v4932_v8 = vpack.c.bf16 %v4196_v5, %v1128_v7  ;;  %v4890_v5 = vpack.c.bf16 %v670_v4, %v669_v3 }
 0x169   : > { %4928 = vmatprep.subr.msk.bf16.mxu1 %vm5740_vm1, %v4926_v6 }
 0x16a   : > { %4931 = vmatpush3.bf16.xpose.msk.msra.mxu1 %vm5740_vm1, %v4926_v6  ;;  %v1587_v6 = vlaneseq }
 0x16b   : > { %4934 = vmatprep.subr.msk.bf16.mxu1 %vm5740_vm1, %v4932_v8 }
 0x16c   : > { %v5805_v7 = vshrl.u32 %v1587_v6, 7 }
 0x171   : > { %4412 = vmatmul.mubr.msk.f32.vlgmr.msra.gmra.mrb[12].mxu1 %vm1594_vm0, %v4021_v57  ;;  %v4874_v57 = vpack.c.bf16 %v662_v56, %v661_v55 }
 0x172   : > { %4937 = vmatpush3.bf16.xpose.msk.msra.mxu1 %vm5740_vm1, %v4932_v8  ;;  %4418 = vmatprep.mubr.msk.f32.mxu1 %vm1594_vm0, %v828_v60  ;;  %v1591_v8 = vand.u32 127, %v1587_v6 }
 0x173   : > { %4875 = vmatprep.subr.bf16.mxu0 %v4874_v57 }
 0x174   : > { %4877 = vmatpush3.bf16.msra.mxu0 %v4874_v57  ;;  %vm1592_vm2 = vcmp.ge.s32.totalorder %v5805_v7, %v1591_v8 }
 0x179   : > { %4419 = vmatmul.mubr.msk.f32.vlgmr.msra.gmra.mrb[14].mxu1 %vm1594_vm0, %v4056_v59  ;;  %v664_v59 = vld [vmem:[%s5522_s26 + $0x548] sm:$0xff] }
 0x17a   : > { %4425 = vmatprep.mubr.msk.f32.mxu1 %vm1594_vm0, %v903_v63  ;;  %v4878_v60 = vpack.c.bf16 %v664_v59, %v663_v58  ;;  %v666_v63 = vld [vmem:[%s5522_s26 + $0x558] sm:$0xff] }
 0x17c   : > { %4879 = vmatprep.subr.bf16.mxu0 %v4878_v60 }
 0x17d   : > { %4881 = vmatpush3.bf16.msra.mxu0 %v4878_v60 }
 0x185   : > { %v4231_v9 = vpop.f32.mrb[6].mxu0 }
 0x186   : > { %v1203_v10 = vpop.f32.mrb[7].mxu0  ;;  %v4266_v11 = vpop.f32.mrb[6].mxu1 }
 0x187   : > { %v4938_v12 = vpack.c.bf16 %v4231_v9, %v1203_v10  ;;  %v1278_v13 = vpop.f32.mrb[7].mxu1  ;;  %v1589_v9 = vadd.s32 8, %v5805_v7 }
 0x188   : > { %v4944_v14 = vpack.c.bf16 %v4266_v11, %v1278_v13 }
 0x189   : > { %4940 = vmatprep.subr.msk.bf16.mxu1 %vm5740_vm1, %v4938_v12  ;;  %vm1593_vm4 = vcmp.ge.s32.totalorder %v1589_v9, %v1591_v8 }
 0x18a   : > { %4943 = vmatpush3.bf16.xpose.msk.msra.mxu1 %vm5740_vm1, %v4938_v12 }
 0x18b   : > { %4946 = vmatprep.subr.msk.bf16.mxu1 %vm5740_vm1, %v4944_v14 }
 0x191   : > { %4426 = vmatmul.mubr.msk.f32.vlgmr.msra.gmra.mrb[16].mxu1 %vm1594_vm0, %v4091_v62  ;;  %v665_v62 = vld [vmem:[%s5522_s26 + $0x550] sm:$0xff] }
 0x192   : > { %4949 = vmatpush3.bf16.xpose.msk.msra.mxu1 %vm5740_vm1, %v4944_v14  ;;  %4432 = vmatprep.mubr.msk.f32.mxu1 %vm1594_vm0, %v978_v1  ;;  %v4882_v25 = vpack.c.bf16 %v666_v63, %v665_v62  ;;  %v668_v1 = vld [vmem:[%s5522_s26 + $0x568] sm:$0xff] }
 0x194   : > { %4883 = vmatprep.subr.bf16.mxu0 %v4882_v25 }
 0x195   : > { %4885 = vmatpush3.bf16.msra.mxu0 %v4882_v25 }
 0x199   : > { %4433 = vmatmul.mubr.msk.f32.vlgmr.msra.gmra.mrb[18].mxu1 %vm1594_vm0, %v4126_v0  ;;  %v667_v0 = vld [vmem:[%s5522_s26 + $0x560] sm:$0xff] }
 0x19a   : > { %v4886_v2 = vpack.c.bf16 %v668_v1, %v667_v0 }
 0x19c   : > { %4887 = vmatprep.subr.bf16.mxu0 %v4886_v2 }
 0x19d   : > { %4889 = vmatpush3.bf16.msra.mxu0 %v4886_v2 }
 0x19e   : > { %4891 = vmatprep.subr.bf16.mxu0 %v4890_v5 }
 0x1a1   : > { %4893 = vmatpush3.bf16.msra.mxu0 %v4890_v5 }
 0x1a4   : > { %4370 = vmatmul.mubr.f32.vlgmr.msra.gmra.mrb[10].mxu0 %v5596_v61 }
 0x1a6   : > { %v4336_v15 = vpop.f32.mrb[8].mxu1 }
 0x1a7   : > { %v1428_v16 = vpop.f32.mrb[9].mxu1 }
 0x1a8   : > { %v4954_v17 = vpack.c.bf16 %v4336_v15, %v1428_v16 }
 0x1aa   : > { %4955 = vmatprep.subr.bf16.mxu1 %v4954_v17 }
 0x1ab   : > { %4957 = vmatpush3.bf16.msra.mxu1 %v4954_v17 }
 0x1bb   : > { %v4301_v62 = vpop.f32.mrb[8].mxu0 }
 0x1bc   : > { %v1353_v63 = vpop.f32.mrb[9].mxu0 }
 0x1bd   : > { %v4950_v25 = vpack.c.bf16 %v4301_v62, %v1353_v63 }
 0x1bf   : > { %4951 = vmatprep.subr.bf16.mxu0 %v4950_v25 }
 0x1c0   : > { %4953 = vmatpush3.bf16.msra.mxu0 %v4950_v25 }
 0x1c6   : > { %v4406_v18 = vpop.f32.mrb[10].mxu1 }
 0x1c7   : > { %v1578_v19 = vpop.f32.mrb[11].mxu1 }
 0x1c8   : > { %v5767_v20 = vpack.c.bf16 %v4406_v18, %v1578_v19 }
 0x1ca   : > { %4963 = vmatprep.subr.bf16.mxu1 %v5767_v20 }
 0x244   : > { %v4413_v10 = vpop.f32.mrb[12].mxu1 }
 0x245   : > { %v1673_v11 = vpop.f32.mrb[13].mxu1  ;;  %v1948_v14 = vsel %vm1593_vm4, %v4413_v10, -1e+30 }
 0x246   : > { %v1947_v12 = vsel %vm1592_vm2, %v1673_v11, -1e+30  ;;  %v1959_v61 = vsel %vm1955_vm3, %v1948_v14, -inf }
 0x247   : > { %v1956_v13 = vsel %vm1955_vm3, %v1947_v12, -inf }
 0x248   : > { %1957 = vmax.xlane.f32.xlu0 %v1956_v13 }
 0x24c   : > { %1960 = vmax.xlane.f32.xlu0 %v1959_v61  ;;  %v4420_v15 = vpop.f32.mrb[14].mxu1 }
 0x24d   : > { %v1760_v16 = vpop.f32.mrb[15].mxu1  ;;  %v1950_v19 = vsel %vm1593_vm4, %v4420_v15, -1e+30 }
 0x24e   : > { %v1949_v17 = vsel %vm1592_vm2, %v1760_v16, -1e+30  ;;  %v1965_v21 = vsel %vm1955_vm3, %v1950_v19, -inf }
 0x24f   : > { %v1962_v18 = vsel %vm1955_vm3, %v1949_v17, -inf }
 0x250   : > { %1963 = vmax.xlane.f32.xlu1 %v1962_v18 }
 0x254   : > { %1966 = vmax.xlane.f32.xlu1 %v1965_v21 }
 0x264   : > { %v4427_v22 = vpop.f32.mrb[16].mxu1 }
 0x265   : > { %v1952_v23 = vsel %vm1593_vm4, %v4427_v22, -1e+30  ;;  %v1847_v24 = vpop.f32.mrb[17].mxu1 }
 0x266   : > { %v1951_v26 = vsel %vm1592_vm2, %v1847_v24, -1e+30  ;;  %v1971_v27 = vsel %vm1955_vm3, %v1952_v23, -inf  ;;  %v2368_v24 = vld [vmem:[%s5527_s30] sm:$0xff] }
 0x267   : > { %1972 = vmax.xlane.f32.xlu1 %v1971_v27  ;;  %v1968_v28 = vsel %vm1955_vm3, %v1951_v26, -inf }
 0x268   : > { %1969 = vmax.xlane.f32.xlu0 %v1968_v28 }
 0x26c   : > { %v4434_v29 = vpop.f32.mrb[18].mxu1 }
 0x26d   : > { %v1954_v30 = vsel %vm1593_vm4, %v4434_v29, -1e+30  ;;  %v1934_v31 = vpop.f32.mrb[19].mxu1 }
 0x26e   : > { %v1953_v32 = vsel %vm1592_vm2, %v1934_v31, -1e+30  ;;  %v1977_v33 = vsel %vm1955_vm3, %v1954_v30, -inf }
 0x26f   : > { %1978 = vmax.xlane.f32.xlu1 %v1977_v33  ;;  %v1974_v34 = vsel %vm1955_vm3, %v1953_v32, -inf }
 0x270   : > { %1975 = vmax.xlane.f32.xlu0 %v1974_v34 }
 0x277   : > { %v4371_v61 = vpop.f32.mrb[10].mxu0 }
 0x278   : > { %v1503_v15 = vpop.f32.mrb[11].mxu0 }
 0x279   : > { %v4958_v16 = vpack.c.bf16 %v4371_v61, %v1503_v15 }
 0x27b   : > { %4959 = vmatprep.subr.bf16.mxu0 %v4958_v16 }
 0x2d5   : > { %v1958_v35 = vpop.xlane.xlu0 %1957 }
 0x2d6   : > { %v1980_v36 = vsub.f32 %v1947_v12, %v1958_v35 }
 0x2d8   : > { %v1988_v37 = vmul.f32 1.442695, %v1980_v36 }
 0x2d9   : > { %v1961_v38 = vpop.xlane.xlu0 %1960 }
 0x2da   : > { %5239 = vpow2.f32 %v1988_v37  ;;  %v1981_v39 = vsub.f32 %v1948_v14, %v1961_v38 }
 0x2dc   : > { %v1990_v40 = vmul.f32 1.442695, %v1981_v39  ;;  %v2370_v39 = vld [vmem:[%s5527_s30 + $0x10] sm:$0xff] }
 0x2dd   : > { %v1964_v41 = vpop.xlane.xlu1 %1963 }
 0x2de   : > { %5241 = vpow2.f32 %v1990_v40  ;;  %v1982_v42 = vsub.f32 %v1949_v17, %v1964_v41  ;;  %v2371_v40 = vld [vmem:[%s5527_s30 + $0x18] sm:$0xff] }
 0x2e0   : > { %v1992_v43 = vmul.f32 1.442695, %v1982_v42 }
 0x2e1   : > { %v1967_v44 = vpop.xlane.xlu1 %1966 }
 0x2e2   : > { %5243 = vpow2.f32 %v1992_v43  ;;  %v1983_v45 = vsub.f32 %v1950_v19, %v1967_v44  ;;  %v4970_v44 = vpack.c.bf16 %v2371_v40, %v2370_v39 }
 0x2e4   : > { %v5240_v46 = vpop.eup %5239  ;;  %v1994_v47 = vmul.f32 1.442695, %v1983_v45 }
 0x2e5   : > { %v2004_v48 = vsel %vm1955_vm3, %v5240_v46, 0.0 }
 0x2e6   : > { %5245 = vpow2.f32 %v1994_v47  ;;  %2005 = vadd.xlane.f32.xlu0 %v2004_v48  ;;  %v2372_v48 = vld [vmem:[%s5527_s30 + $0x20] sm:$0xff] }
 0x2e8   : > { %v5242_v49 = vpop.eup %5241 }
 0x2e9   : > { %v2007_v50 = vsel %vm1955_vm3, %v5242_v49, 0.0 }
 0x2ea   : > { %2008 = vadd.xlane.f32.xlu1 %v2007_v50 }
 0x2ec   : > { %v5244_v51 = vpop.eup %5243 }
 0x2ed   : > { %v2010_v52 = vsel %vm1955_vm3, %v5244_v51, 0.0 }
 0x2ee   : > { %2011 = vadd.xlane.f32.xlu0 %v2010_v52  ;;  %v2375_v52 = vld [vmem:[%s5527_s30 + $0x38] sm:$0xff] }
 0x2f0   : > { %v5832_v53 = vpop.eup %5245 }
 0x2f1   : > { %v2013_v54 = vsel %vm1955_vm3, %v5832_v53, 0.0 }
 0x2f2   : > { %2014 = vadd.xlane.f32.xlu1 %v2013_v54 }
 0x2f4   : > { %v1973_v55 = vpop.xlane.xlu1 %1972 }
 0x2f5   : > { %v1985_v56 = vsub.f32 %v1952_v23, %v1973_v55  ;;  %v1970_v57 = vpop.xlane.xlu0 %1969 }
 0x2f6   : > { %v1984_v58 = vsub.f32 %v1951_v26, %v1970_v57  ;;  %v2369_v26 = vld [vmem:[%s5527_s30 + $0x8] sm:$0xff] }
 0x2f7   : > { %v1998_v59 = vmul.f32 1.442695, %v1985_v56  ;;  %v4966_v29 = vpack.c.bf16 %v2369_v26, %v2368_v24  ;;  %v2376_v56 = vld [vmem:[%s5527_s30 + $0x40] sm:$0xff]  ;;  %v2377_v57 = vld [vmem:[%s5527_s30 + $0x48] sm:$0xff]  ;;  %v2760_v24 = vld [vmem:[%s5532_s12 + $0x18] sm:$0xff] }
 0x2f8   : > { %v1996_v60 = vmul.f32 1.442695, %v1984_v58  ;;  %v4982_v58 = vpack.c.bf16 %v2377_v57, %v2376_v56 }
 0x2f9   : > { %5247 = vpow2.f32 %v1998_v59  ;;  %v2378_v59 = vld [vmem:[%s5527_s30 + $0x50] sm:$0xff] }
 0x2fa   : > { %5249 = vpow2.f32 %v1996_v60  ;;  %v2379_v60 = vld [vmem:[%s5527_s30 + $0x58] sm:$0xff] }
 0x2fb   : > { %v4986_v25 = vpack.c.bf16 %v2379_v60, %v2378_v59 }
 0x2fc   : > { %v1979_v0 = vpop.xlane.xlu1 %1978 }
 0x2fd   : > { %v1987_v1 = vsub.f32 %v1954_v30, %v1979_v0  ;;  %v1976_v2 = vpop.xlane.xlu0 %1975  ;;  %v2380_v0 = vld [vmem:[%s5527_s30 + $0x60] sm:$0xff] }
 0x2fe   : > { %v1986_v3 = vsub.f32 %v1953_v32, %v1976_v2 }
 0x2ff   : > { %v2002_v4 = vmul.f32 1.442695, %v1987_v1  ;;  %v2381_v1 = vld [vmem:[%s5527_s30 + $0x68] sm:$0xff] }
 0x300   : > { %v2000_v5 = vmul.f32 1.442695, %v1986_v3  ;;  %v4990_v2 = vpack.c.bf16 %v2381_v1, %v2380_v0  ;;  %v2382_v3 = vld [vmem:[%s5527_s30 + $0x70] sm:$0xff] }
 0x301   : > { %5251 = vpow2.f32 %v2002_v4  ;;  %v2383_v4 = vld [vmem:[%s5527_s30 + $0x78] sm:$0xff] }
 0x302   : > { %5253 = vpow2.f32 %v2000_v5 }
 0x303   : > { %v5248_v6 = vpop.eup %5247 }
 0x304   : > { %v5250_v8 = vpop.eup %5249  ;;  %v2019_v9 = vsel %vm1955_vm3, %v5248_v6, 0.0 }
 0x305   : > { %2020 = vadd.xlane.f32.xlu1 %v2019_v9  ;;  %v2016_v10 = vsel %vm1955_vm3, %v5250_v8, 0.0 }
 0x306   : > { %2017 = vadd.xlane.f32.xlu0 %v2016_v10 }
 0x30b   : > { %v5252_v11 = vpop.eup %5251 }
 0x30c   : > { %v5254_v12 = vpop.eup %5253  ;;  %v2025_v13 = vsel %vm1955_vm3, %v5252_v11, 0.0 }
 0x30d   : > { %2026 = vadd.xlane.f32.xlu1 %v2025_v13  ;;  %v2022_v14 = vsel %vm1955_vm3, %v5254_v12, 0.0 }
 0x30e   : > { %2023 = vadd.xlane.f32.xlu0 %v2022_v14 }
 0x373   : > { %v2006_v17 = vpop.xlane.xlu0 %2005 }
 0x374   : > { %5255 = vrcp.f32 %v2006_v17  ;;  %v5279_v17 = vld [vmem:[#allocation2 + $0x8] sm:$0xff] }
 0x377   : > { %v2009_v18 = vpop.xlane.xlu1 %2008 }
 0x378   : > { %5257 = vrcp.f32 %v2009_v18 }
 0x37b   : > { %v2012_v19 = vpop.xlane.xlu0 %2011 }
 0x37c   : > { %5259 = vrcp.f32 %v2012_v19  ;;  %v5280_v19 = vld [vmem:[#allocation2] sm:$0xff] }
 0x37e   : > { %v5256_v21 = vpop.eup %5255 }
 0x37f   : > { %v2015_v22 = vpop.xlane.xlu1 %2014  ;;  %v2036_v23 = vmul.f32 %v5256_v21, %v5240_v46 }
 0x380   : > { %5261 = vrcp.f32 %v2015_v22  ;;  %v2758_v22 = vld [vmem:[%s5532_s12 + $0x8] sm:$0xff] }
 0x381   : > { %4439 = vmatprep.mubr.msk.f32.mxu0 %vm1955_vm3, %v2036_v23  ;;  %v2762_v23 = vld [vmem:[%s5532_s12 + $0x28] sm:$0xff] }
 0x382   : > { %v5258_v27 = vpop.eup %5257  ;;  %v4998_v26 = vpack.c.bf16 %v2762_v23, %v2758_v22  ;;  %v2789_v22 = vld [vmem:[%s5532_s12 + $0x100] sm:$0xff] }
 0x383   : > { %v2037_v28 = vmul.f32 %v5258_v27, %v5242_v49  ;;  %v2373_v49 = vld [vmem:[%s5527_s30 + $0x28] sm:$0xff]  ;;  %v2764_v27 = vld [vmem:[%s5532_s12 + $0x38] sm:$0xff]  ;;  %v2793_v23 = vld [vmem:[%s5532_s12 + $0x120] sm:$0xff] }
 0x384   : > { %v4974_v50 = vpack.c.bf16 %v2373_v49, %v2372_v48  ;;  %v2776_v49 = vld [vmem:[%s5532_s12 + $0x98] sm:$0xff] }
 0x385   : > { %4440 = vmatmul.mubr.msk.f32.vlgmr.msra.gmra.mrb[12].mxu0 %vm1955_vm3, %v2037_v28  ;;  %v2757_v28 = vld [vmem:[%s5532_s12] sm:$0xff] }
 0x386   : > { %v5260_v30 = vpop.eup %5259  ;;  %4961 = vmatpush3.bf16.msra.mxu0 %v4958_v16 }
 0x387   : > { %v2038_v31 = vmul.f32 %v5260_v30, %v5244_v51  ;;  %4967 = vmatprep.subr.bf16.mxu0 %v4966_v29  ;;  %v2374_v51 = vld [vmem:[%s5527_s30 + $0x30] sm:$0xff]  ;;  %v5030_v30 = vpack.c.bf16 %v2764_v27, %v2760_v24 }
 0x388   : > { %v4978_v55 = vpack.c.bf16 %v2375_v52, %v2374_v51  ;;  %v2773_v51 = vld [vmem:[%s5532_s12 + $0x80] sm:$0xff]  ;;  %v2791_v27 = vld [vmem:[%s5532_s12 + $0x110] sm:$0xff] }
 0x389   : > { %4446 = vmatprep.mubr.msk.f32.mxu1 %vm1955_vm3, %v2038_v31 }
 0x38a   : > { %v5262_v32 = vpop.eup %5261 }
 0x38b   : > { %v2039_v33 = vmul.f32 %v5262_v32, %v5832_v53  ;;  %v2759_v32 = vld [vmem:[%s5532_s12 + $0x10] sm:$0xff] }
 0x38d   : > { %4447 = vmatmul.mubr.msk.f32.vlgmr.msra.gmra.mrb[20].mxu1 %vm1955_vm3, %v2039_v33  ;;  %v2763_v33 = vld [vmem:[%s5532_s12 + $0x30] sm:$0xff] }
 0x38e   : > { %4965 = vmatpush3.bf16.msra.mxu1 %v5767_v20 }
 0x38f   : > { %4999 = vmatprep.subr.bf16.mxu1 %v4998_v26  ;;  %v5016_v26 = vpack.c.bf16 %v2793_v23, %v2789_v22 }
 0x392   : > { %v2021_v34 = vpop.xlane.xlu1 %2020 }
 0x393   : > { %5263 = vrcp.f32 %v2021_v34  ;;  %v2018_v35 = vpop.xlane.xlu0 %2017  ;;  %v2766_v34 = vld [vmem:[%s5532_s12 + $0x48] sm:$0xff] }
 0x394   : > { %5265 = vrcp.f32 %v2018_v35  ;;  %v5032_v35 = vpack.c.bf16 %v2763_v33, %v2759_v32  ;;  %v2802_v32 = vld [vmem:[%s5532_s12 + $0x168] sm:$0xff]  ;;  %v2800_v33 = vld [vmem:[%s5532_s12 + $0x158] sm:$0xff] }
 0x39a   : > { %v2027_v36 = vpop.xlane.xlu1 %2026 }
 0x39b   : > { %5267 = vrcp.f32 %v2027_v36  ;;  %v2024_v37 = vpop.xlane.xlu0 %2023  ;;  %v2770_v36 = vld [vmem:[%s5532_s12 + $0x68] sm:$0xff] }
 0x39c   : > { %5269 = vrcp.f32 %v2024_v37  ;;  %v2768_v37 = vld [vmem:[%s5532_s12 + $0x58] sm:$0xff]  ;;  %v5002_v39 = vpack.c.bf16 %v2770_v36, %v2766_v34 }
 0x39d   : > { %v5264_v38 = vpop.eup %5263  ;;  %v2804_v34 = vld [vmem:[%s5532_s12 + $0x178] sm:$0xff] }
 0x39e   : > { %v5266_v41 = vpop.eup %5265  ;;  %v2041_v43 = vmul.f32 %v5264_v38, %v5248_v6  ;;  %v2772_v38 = vld [vmem:[%s5532_s12 + $0x78] sm:$0xff]  ;;  %v5050_v36 = vpack.c.bf16 %v2804_v34, %v2800_v33  ;;  %v3023_v33 = vld [vmem:[%s5542_s29 + $0x90] sm:$0xff] }
 0x39f   : > { %v2040_v42 = vmul.f32 %v5266_v41, %v5250_v8  ;;  %v4994_v8 = vpack.c.bf16 %v2383_v4, %v2382_v3  ;;  %v5034_v40 = vpack.c.bf16 %v2772_v38, %v2768_v37  ;;  %v2765_v41 = vld [vmem:[%s5532_s12 + $0x40] sm:$0xff]  ;;  %v2786_v3 = vld [vmem:[%s5532_s12 + $0xe8] sm:$0xff]  ;;  %v2784_v4 = vld [vmem:[%s5532_s12 + $0xd8] sm:$0xff] }
 0x3a0   : > { %v2797_v37 = vld [vmem:[%s5532_s12 + $0x140] sm:$0xff] }
 0x3a1   : > { %4453 = vmatprep.mubr.msk.f32.mxu0 %vm1955_vm3, %v2040_v42  ;;  %v2769_v42 = vld [vmem:[%s5532_s12 + $0x60] sm:$0xff] }
 0x3a2   : > { %4454 = vmatmul.mubr.msk.f32.vlgmr.msra.gmra.mrb[14].mxu0 %vm1955_vm3, %v2041_v43  ;;  %v2767_v43 = vld [vmem:[%s5532_s12 + $0x50] sm:$0xff]  ;;  %v2801_v38 = vld [vmem:[%s5532_s12 + $0x160] sm:$0xff] }
 0x3a3   : > { %4969 = vmatpush3.bf16.msra.mxu0 %v4966_v29  ;;  %v2761_v29 = vld [vmem:[%s5532_s12 + $0x20] sm:$0xff] }
 0x3a4   : > { %4971 = vmatprep.subr.bf16.mxu0 %v4970_v44  ;;  %v5000_v31 = vpack.c.bf16 %v2761_v29, %v2757_v28  ;;  %v2795_v28 = vld [vmem:[%s5532_s12 + $0x130] sm:$0xff]  ;;  %v2798_v29 = vld [vmem:[%s5532_s12 + $0x148] sm:$0xff] }
 0x3a5   : > { %v5268_v20 = vpop.eup %5267 }
 0x3a6   : > { %v5270_v45 = vpop.eup %5269  ;;  %v2043_v47 = vmul.f32 %v5268_v20, %v5252_v11  ;;  %v5875_v11 = vsub.s32 0, %v5805_v7  ;;  %v2771_v20 = vld [vmem:[%s5532_s12 + $0x70] sm:$0xff] }
 0x3a7   : > { %v2042_v46 = vmul.f32 %v5270_v45, %v5254_v12  ;;  %4973 = vmatpush3.bf16.msra.mxu0 %v4970_v44  ;;  %v5878_v12 = vld [vmem:[%s5547_s20] sm:$0xff]  ;;  %v5004_v44 = vpack.c.bf16 %v2769_v42, %v2765_v41  ;;  %v2774_v45 = vld [vmem:[%s5532_s12 + $0x88] sm:$0xff]  ;;  %v2803_v41 = vld [vmem:[%s5532_s12 + $0x170] sm:$0xff] }
 0x3a8   : > { %4975 = vmatprep.subr.bf16.mxu0 %v4974_v50  ;;  %v2717_v13 = vrot.slane %v5878_v12, %v5875_v11  ;;  %v2806_v42 = vld [vmem:[%s5532_s12 + $0x188] sm:$0xff] }
 0x3a9   : > { %4460 = vmatprep.mubr.msk.f32.mxu1 %vm1955_vm3, %v2042_v46  ;;  %v2778_v46 = vld [vmem:[%s5532_s12 + $0xa8] sm:$0xff] }
 0x3aa   : > { %4461 = vmatmul.mubr.msk.f32.vlgmr.msra.gmra.mrb[22].mxu1 %vm1955_vm3, %v2043_v47  ;;  %v5036_v47 = vpack.c.bf16 %v2771_v20, %v2767_v43  ;;  %v5006_v48 = vpack.c.bf16 %v2778_v46, %v2774_v45  ;;  %v2810_v43 = vld [vmem:[%s5532_s12 + $0x1a8] sm:$0xff]  ;;  %v2808_v45 = vld [vmem:[%s5532_s12 + $0x198] sm:$0xff] }
 0x3ab   : > { %5001 = vmatpush1.bf16.msra.mxu1 %v5000_v31  ;;  %v5048_v31 = vpack.c.bf16 %v2795_v28, %v2791_v27  ;;  %v5022_v20 = vpack.c.bf16 %v2810_v43, %v2806_v42  ;;  %v2812_v46 = vld [vmem:[%s5532_s12 + $0x1b8] sm:$0xff]  ;;  %v3005_v28 = vld [vmem:[%s5542_s29] sm:$0xff] }
 0x3ac   : > { %5003 = vmatprep.subr.bf16.mxu1 %v5002_v39  ;;  %v2799_v39 = vld [vmem:[%s5532_s12 + $0x150] sm:$0xff] }
 0x3af   : > { %5005 = vmatpush1.bf16.msra.mxu1 %v5004_v44  ;;  %v5052_v44 = vpack.c.bf16 %v2803_v41, %v2799_v39  ;;  %v3008_v41 = vld [vmem:[%s5542_s29 + $0x18] sm:$0xff] }
 0x3b0   : > { %5007 = vmatprep.subr.bf16.mxu1 %v5006_v48  ;;  %v5054_v48 = vpack.c.bf16 %v2812_v46, %v2808_v45  ;;  %v3025_v45 = vld [vmem:[%s5542_s29 + $0xa0] sm:$0xff]  ;;  %v3026_v46 = vld [vmem:[%s5542_s29 + $0xa8] sm:$0xff] }
 0x458   : > { %v4441_v53 = vpop.f32.mrb[12].mxu0 }
 0x459   : > { %v2116_v54 = vpop.f32.mrb[13].mxu0 }
 0x45a   : > { %4471 = vmatprep.mubr.msk.f32.mxu0 %vm1594_vm0, %v2116_v54  ;;  %v2775_v54 = vld [vmem:[%s5532_s12 + $0x90] sm:$0xff] }
 0x45b   : > { %4472 = vmatmul.mubr.msk.f32.vlgmr.msra.gmra.mrb[16].mxu0 %vm1594_vm0, %v4441_v53  ;;  %v2777_v53 = vld [vmem:[%s5532_s12 + $0xa0] sm:$0xff] }
 0x45c   : > { %4977 = vmatpush3.bf16.msra.mxu0 %v4974_v50  ;;  %v2780_v50 = vld [vmem:[%s5532_s12 + $0xb8] sm:$0xff]  ;;  %v5008_v56 = vpack.c.bf16 %v2777_v53, %v2773_v51  ;;  %v2811_v51 = vld [vmem:[%s5532_s12 + $0x1b0] sm:$0xff]  ;;  %v2814_v53 = vld [vmem:[%s5532_s12 + $0x1c8] sm:$0xff] }
 0x45d   : > { %4979 = vmatprep.subr.bf16.mxu0 %v4978_v55  ;;  %v5038_v52 = vpack.c.bf16 %v2780_v50, %v2776_v49  ;;  %v2809_v49 = vld [vmem:[%s5532_s12 + $0x1a0] sm:$0xff]  ;;  %v2807_v50 = vld [vmem:[%s5532_s12 + $0x190] sm:$0xff] }
 0x45e   : > { %5009 = vmatpush1.bf16.msra.mxu1 %v5008_v56  ;;  %v5056_v56 = vpack.c.bf16 %v2811_v51, %v2807_v50 }
 0x460   : > { %v4448_v62 = vpop.f32.mrb[20].mxu1  ;;  %4981 = vmatpush3.bf16.msra.mxu0 %v4978_v55  ;;  %v2779_v55 = vld [vmem:[%s5532_s12 + $0xb0] sm:$0xff] }
 0x461   : > { %v2197_v63 = vpop.f32.mrb[21].mxu1  ;;  %4983 = vmatprep.subr.bf16.mxu0 %v4982_v58  ;;  %v5040_v57 = vpack.c.bf16 %v2779_v55, %v2775_v54  ;;  %v2818_v54 = vld [vmem:[%s5532_s12 + $0x1e8] sm:$0xff]  ;;  %v2816_v55 = vld [vmem:[%s5532_s12 + $0x1d8] sm:$0xff] }
 0x462   : > { %4482 = vmatprep.mubr.msk.f32.mxu0 %vm1594_vm0, %v2197_v63 }
 0x463   : > { %4483 = vmatmul.mubr.msk.f32.vlgmr.msra.gmra.mrb[16].mxu0 %vm1594_vm0, %v4448_v62 }
 0x464   : > { %4985 = vmatpush3.bf16.msra.mxu0 %v4982_v58 }
 0x465   : > { %4987 = vmatprep.subr.bf16.mxu0 %v4986_v25 }
 0x468   : > { %4989 = vmatpush3.bf16.msra.mxu0 %v4986_v25 }
 0x469   : > { %4991 = vmatprep.subr.bf16.mxu0 %v4990_v2 }
 0x475   : > { %v4455_v5 = vpop.f32.mrb[14].mxu0 }
 0x476   : > { %v2278_v6 = vpop.f32.mrb[15].mxu0 }
 0x477   : > { %4493 = vmatprep.mubr.msk.f32.mxu0 %vm1594_vm0, %v2278_v6  ;;  %v2788_v6 = vld [vmem:[%s5532_s12 + $0xf8] sm:$0xff] }
 0x478   : > { %4494 = vmatmul.mubr.msk.f32.vlgmr.msra.gmra.mrb[16].mxu0 %vm1594_vm0, %v4455_v5 }
 0x479   : > { %4993 = vmatpush3.bf16.msra.mxu0 %v4990_v2  ;;  %v2782_v2 = vld [vmem:[%s5532_s12 + $0xc8] sm:$0xff] }
 0x47a   : > { %4995 = vmatprep.subr.bf16.mxu0 %v4994_v8  ;;  %v5010_v5 = vpack.c.bf16 %v2786_v3, %v2782_v2 }
 0x47c   : > { %5011 = vmatprep.subr.bf16.mxu1 %v5010_v5  ;;  %v3022_v5 = vld [vmem:[%s5542_s29 + $0x88] sm:$0xff] }
 0x47d   : > { %4997 = vmatpush3.bf16.msra.mxu0 %v4994_v8  ;;  %v4462_v9 = vpop.f32.mrb[22].mxu1  ;;  %v2781_v8 = vld [vmem:[%s5532_s12 + $0xc0] sm:$0xff] }
 0x47e   : > { %v2359_v10 = vpop.f32.mrb[23].mxu1  ;;  %5031 = vmatprep.subr.bf16.mxu0 %v5030_v30  ;;  %v5381_v30 = vmov 0.0  }
 0x47f   : > { %4504 = vmatprep.mubr.msk.f32.mxu0 %vm1594_vm0, %v2359_v10  ;;  %v5042_v10 = vpack.c.bf16 %v2788_v6, %v2784_v4  ;;  %2907 = vmatprep.mubr.f32.mxu1 %v5381_v30  ;;  %v3021_v4 = vld [vmem:[%s5542_s29 + $0x80] sm:$0xff] }
 0x480   : > { %4505 = vmatmul.mubr.msk.f32.vlgmr.msra.gmra.mrb[16].mxu0 %vm1594_vm0, %v4462_v9  ;;  %v2785_v9 = vld [vmem:[%s5532_s12 + $0xe0] sm:$0xff] }
 0x481   : > { %5033 = vmatpush1.bf16.msra.mxu0 %v5032_v35  ;;  %2984 = vmatprep.mubr.f32.mxu0 %v5381_v30  ;;  %v5018_v35 = vpack.c.bf16 %v2802_v32, %v2798_v29  ;;  %v3053_v6 = vld [vmem:[%s5542_s29 + $0x180] sm:$0xff]  ;;  %v3006_v29 = vld [vmem:[%s5542_s29 + $0x8] sm:$0xff] }
 0x482   : > { %5035 = vmatprep.subr.bf16.mxu0 %v5034_v40  ;;  %v5020_v40 = vpack.c.bf16 %v2801_v38, %v2797_v37  ;;  %v3038_v32 = vld [vmem:[%s5542_s29 + $0x108] sm:$0xff]  ;;  %v5064_v39 = vpack.c.bf16 %v3006_v29, %v3005_v28  ;;  %v3064_v28 = vld [vmem:[%s5542_s29 + $0x1d8] sm:$0xff] }
 0x485   : > { %5037 = vmatpush1.bf16.msra.mxu0 %v5036_v47  ;;  %v2805_v47 = vld [vmem:[%s5532_s12 + $0x180] sm:$0xff] }
 0x486   : > { %5039 = vmatprep.subr.bf16.mxu0 %v5038_v52  ;;  %v5024_v52 = vpack.c.bf16 %v2809_v49, %v2805_v47  ;;  %v3057_v47 = vld [vmem:[%s5542_s29 + $0x1a0] sm:$0xff] }
 0x489   : > { %5041 = vmatpush1.bf16.msra.mxu0 %v5040_v57  ;;  %v5026_v57 = vpack.c.bf16 %v2818_v54, %v2814_v53  ;;  %v3010_v53 = vld [vmem:[%s5542_s29 + $0x28] sm:$0xff]  ;;  %v5070_v54 = vpack.c.bf16 %v3026_v46, %v3025_v45  ;;  %v3049_v46 = vld [vmem:[%s5542_s29 + $0x160] sm:$0xff] }
 0x48a   : > { %5043 = vmatprep.subr.bf16.mxu0 %v5042_v10  ;;  %v3018_v45 = vld [vmem:[%s5542_s29 + $0x68] sm:$0xff] }
 0x553   : > { %v4506_v14 = vpop.f32.mrb[16].mxu0 }
 0x554   : > { %v2719_v61 = vadd.f32 %v4506_v14, %v2717_v13  ;;  %v2699_v15 = vpop.f32.mrb[17].mxu0  ;;  %v2783_v14 = vld [vmem:[%s5532_s12 + $0xd0] sm:$0xff] }
 0x555   : > { %v2718_v16 = vadd.f32 %v2717_v13, %v2699_v15  ;;  %v5012_v13 = vpack.c.bf16 %v2785_v9, %v2781_v8  ;;  %v5062_v8 = vpack.c.bf16 %v3022_v5, %v3021_v4  ;;  %v3054_v9 = vld [vmem:[%s5542_s29 + $0x188] sm:$0xff]  ;;  %v3043_v5 = vld [vmem:[%s5542_s29 + $0x130] sm:$0xff] }
 0x556   : > { %v2721_v18 = vadd.f32 %v5279_v17, %v2719_v61  ;;  %v2787_v61 = vld [vmem:[%s5532_s12 + $0xf0] sm:$0xff]  ;;  %v2794_v17 = vld [vmem:[%s5532_s12 + $0x128] sm:$0xff]  ;;  %v5094_v10 = vpack.c.bf16 %v3054_v9, %v3053_v6  ;;  %v3044_v6 = vld [vmem:[%s5542_s29 + $0x138] sm:$0xff] }
 0x557   : > { %v2720_v21 = vadd.f32 %v5280_v19, %v2718_v16  ;;  %v5044_v15 = vpack.c.bf16 %v2787_v61, %v2783_v14  ;;  %5013 = vmatpush1.bf16.msra.mxu1 %v5012_v13  ;;  %v2790_v16 = vld [vmem:[%s5532_s12 + $0x108] sm:$0xff] }
 0x558   : > { %2724 = vadd.xlane.f32.xlu1 %v2721_v18  ;;  %v5014_v19 = vpack.c.bf16 %v2794_v17, %v2790_v16  ;;  %v3030_v9 = vld [vmem:[%s5542_s29 + $0xc8] sm:$0xff] }
 0x559   : > { %2722 = vadd.xlane.f32.xlu0 %v2720_v21  ;;  %5045 = vmatpush1.bf16.msra.mxu0 %v5044_v15 }
 0x55a   : > { %5015 = vmatprep.subr.bf16.mxu1 %v5014_v19  ;;  %v2753_v19 = vsub.s32 3, %v5805_v7 }
 0x55b   : > { %5017 = vmatpush1.bf16.msra.mxu1 %v5016_v26 }
 0x55c   : > { %5019 = vmatprep.subr.bf16.mxu1 %v5018_v35  ;;  %v2754_v26 = vrot.slane %v5878_v12, %v2753_v19  ;;  %v3024_v35 = vld [vmem:[%s5542_s29 + $0x98] sm:$0xff] }
 0x55d   : > { %v5066_v42 = vpack.c.bf16 %v3024_v35, %v3023_v33  ;;  %v3016_v33 = vld [vmem:[%s5542_s29 + $0x58] sm:$0xff] }
 0x55f   : > { %5021 = vmatpush1.bf16.msra.mxu1 %v5020_v40  ;;  %v3007_v40 = vld [vmem:[%s5542_s29 + $0x10] sm:$0xff] }
 0x560   : > { %5023 = vmatprep.subr.bf16.mxu1 %v5022_v20  ;;  %v3040_v20 = vld [vmem:[%s5542_s29 + $0x118] sm:$0xff]  ;;  %v5068_v50 = vpack.c.bf16 %v3008_v41, %v3007_v40  ;;  %v3066_v40 = vld [vmem:[%s5542_s29 + $0x1e8] sm:$0xff] }
 0x563   : > { %5025 = vmatpush1.bf16.msra.mxu1 %v5024_v52  ;;  %v3009_v52 = vld [vmem:[%s5542_s29 + $0x20] sm:$0xff] }
 0x564   : > { %5027 = vmatprep.subr.bf16.mxu1 %v5026_v57  ;;  %v3042_v57 = vld [vmem:[%s5542_s29 + $0x128] sm:$0xff] }
 0x5e5   : > { %v2725_v58 = vpop.xlane.xlu1 %2724 }
 0x5e6   : > { %v2728_v59 = vmul.f32 0.0078125, %v2725_v58  ;;  %v2723_v60 = vpop.xlane.xlu0 %2722  ;;  %v2820_v58 = vld [vmem:[%s5532_s12 + $0x1f8] sm:$0xff] }
 0x5e7   : > { %v2727_v62 = vmul.f32 0.0078125, %v2723_v60  ;;  %v2817_v60 = vld [vmem:[%s5532_s12 + $0x1e0] sm:$0xff] }
 0x5e8   : > { %v5906_v63 = vsub.f32 %v2721_v18, %v2728_v59  ;;  %v2792_v18 = vld [vmem:[%s5532_s12 + $0x118] sm:$0xff]  ;;  %v2813_v59 = vld [vmem:[%s5532_s12 + $0x1c0] sm:$0xff] }
 0x5e9   : > { %v5908_v25 = vsub.f32 %v2720_v21, %v2727_v62  ;;  %v2796_v21 = vld [vmem:[%s5532_s12 + $0x138] sm:$0xff]  ;;  %v5058_v62 = vpack.c.bf16 %v2820_v58, %v2816_v55  ;;  %v5028_v2 = vpack.c.bf16 %v2817_v60, %v2813_v59  ;;  %v3059_v59 = vld [vmem:[%s5542_s29 + $0x1b0] sm:$0xff] }
 0x5ea   : > { %v2732_v0 = vmul.f32 %v5906_v63, %v5906_v63  ;;  %v5046_v24 = vpack.c.bf16 %v2796_v21, %v2792_v18  ;;  %v2747_v18 = vsub.s32 2, %v5805_v7  ;;  %v3028_v58 = vld [vmem:[%s5542_s29 + $0xb8] sm:$0xff] }
 0x5eb   : > { %v2731_v1 = vmul.f32 %v5908_v25, %v5908_v25  ;;  %5029 = vmatpush1.bf16.msra.mxu1 %v5028_v2  ;;  %v3060_v60 = vld [vmem:[%s5542_s29 + $0x1b8] sm:$0xff] }
 0x5ec   : > { %2735 = vadd.xlane.f32.xlu1 %v2732_v0  ;;  %5047 = vmatprep.subr.bf16.mxu0 %v5046_v24  ;;  %v2815_v0 = vld [vmem:[%s5532_s12 + $0x1d0] sm:$0xff]  ;;  %v2748_v22 = vrot.slane %v5878_v12, %v2747_v18  ;;  %v3012_v2 = vld [vmem:[%s5542_s29 + $0x38] sm:$0xff]  ;;  %v5106_v4 = vpack.c.bf16 %v3060_v60, %v3059_v59 }
 0x5ed   : > { %2733 = vadd.xlane.f32.xlu0 %v2731_v1  ;;  %5049 = vmatpush1.bf16.msra.mxu0 %v5048_v31  ;;  %v2819_v1 = vld [vmem:[%s5532_s12 + $0x1f0] sm:$0xff]  ;;  %v3037_v31 = vld [vmem:[%s5542_s29 + $0x100] sm:$0xff]  ;;  %v3052_v60 = vld [vmem:[%s5542_s29 + $0x178] sm:$0xff] }
 0x5ee   : > { %5051 = vmatprep.subr.bf16.mxu0 %v5050_v36  ;;  %v5060_v3 = vpack.c.bf16 %v2819_v1, %v2815_v0  ;;  %5063 = vmatprep.subr.bf16.mxu1 %v5062_v8  ;;  %v3056_v36 = vld [vmem:[%s5542_s29 + $0x198] sm:$0xff]  ;;  %v3011_v1 = vld [vmem:[%s5542_s29 + $0x30] sm:$0xff]  ;;  %v3029_v8 = vld [vmem:[%s5542_s29 + $0xc0] sm:$0xff] }
 0x5ef   : > { %v3051_v59 = vld [vmem:[%s5542_s29 + $0x170] sm:$0xff] }
 0x5f1   : > { %5053 = vmatpush1.bf16.msra.mxu0 %v5052_v44  ;;  %v3039_v44 = vld [vmem:[%s5542_s29 + $0x110] sm:$0xff] }
 0x5f2   : > { %5055 = vmatprep.subr.bf16.mxu0 %v5054_v48  ;;  %v3058_v48 = vld [vmem:[%s5542_s29 + $0x1a8] sm:$0xff]  ;;  %v5100_v51 = vpack.c.bf16 %v3040_v20, %v3039_v44  ;;  %v3017_v20 = vld [vmem:[%s5542_s29 + $0x60] sm:$0xff] }
 0x5f3   : > { %v5102_v55 = vpack.c.bf16 %v3058_v48, %v3057_v47  ;;  %v5088_v47 = vpack.c.bf16 %v3018_v45, %v3017_v20  ;;  %v3050_v48 = vld [vmem:[%s5542_s29 + $0x168] sm:$0xff] }
 0x5f5   : > { %5057 = vmatpush1.bf16.msra.mxu0 %v5056_v56  ;;  %v3041_v56 = vld [vmem:[%s5542_s29 + $0x120] sm:$0xff] }
 0x5f6   : > { %5059 = vmatprep.subr.bf16.mxu0 %v5058_v62  ;;  %v5072_v62 = vpack.c.bf16 %v3010_v53, %v3009_v52  ;;  %v5104_v0 = vpack.c.bf16 %v3042_v57, %v3041_v56  ;;  %v3036_v52 = vld [vmem:[%s5542_s29 + $0xf8] sm:$0xff]  ;;  %v3067_v53 = vld [vmem:[%s5542_s29 + $0x1f0] sm:$0xff] }
 0x5f7   : > { %v3019_v56 = vld [vmem:[%s5542_s29 + $0x70] sm:$0xff]  ;;  %v3020_v57 = vld [vmem:[%s5542_s29 + $0x78] sm:$0xff] }
 0x5f9   : > { %5061 = vmatpush1.bf16.msra.mxu0 %v5060_v3 }
 0x5fa   : > { %5095 = vmatprep.subr.bf16.mxu0 %v5094_v10  ;;  %v3061_v10 = vld [vmem:[%s5542_s29 + $0x1c0] sm:$0xff] }
 0x679   : > { %v2736_v13 = vpop.xlane.xlu1 %2735 }
 0x67a   : > { %v2738_v14 = vmul.f32 0.0078125, %v2736_v13  ;;  %v2734_v61 = vpop.xlane.xlu0 %2733  ;;  %v3062_v13 = vld [vmem:[%s5542_s29 + $0x1c8] sm:$0xff] }
 0x67b   : > { %v2737_v15 = vmul.f32 0.0078125, %v2734_v61  ;;  %v5108_v61 = vpack.c.bf16 %v3044_v6, %v3043_v5 }
 0x67c   : > { %v2740_v16 = vadd.f32 1e-05, %v2738_v14  ;;  %v5076_v14 = vpack.c.bf16 %v3012_v2, %v3011_v1  ;;  %v6042_v1 = vsub.s32 1, %v5805_v7 }
 0x67d   : > { %v2739_v17 = vadd.f32 1e-05, %v2737_v15  ;;  %v3013_v15 = vld [vmem:[%s5542_s29 + $0x40] sm:$0xff] }
 0x67e   : > { %5271 = vrsqrt.f32 %v2740_v16  ;;  %v3014_v16 = vld [vmem:[%s5542_s29 + $0x48] sm:$0xff] }
 0x67f   : > { %5273 = vrsqrt.f32 %v2739_v17  ;;  %v5078_v17 = vpack.c.bf16 %v3030_v9, %v3029_v8  ;;  %v5080_v29 = vpack.c.bf16 %v3014_v16, %v3013_v15 }
 0x688   : > { %v5272_v21 = vpop.eup %5271 }
 0x689   : > { %v5274_v23 = vpop.eup %5273  ;;  %v2744_v27 = vmul.f32 %v5272_v21, %v5906_v63  ;;  %v5096_v63 = vpack.c.bf16 %v3038_v32, %v3037_v31  ;;  %v5110_v21 = vpack.c.bf16 %v3062_v13, %v3061_v10  ;;  %v3015_v32 = vld [vmem:[%s5542_s29 + $0x50] sm:$0xff] }
 0x68a   : > { %v2743_v24 = vmul.f32 %v5274_v23, %v5908_v25  ;;  %v3055_v25 = vld [vmem:[%s5542_s29 + $0x190] sm:$0xff]  ;;  %v3046_v23 = vld [vmem:[%s5542_s29 + $0x148] sm:$0xff]  ;;  %v5084_v41 = vpack.c.bf16 %v3016_v33, %v3015_v32 }
 0x68b   : > { %v2750_v38 = vmul.f32 %v2748_v22, %v2744_v27  ;;  %v5098_v43 = vpack.c.bf16 %v3056_v36, %v3055_v25  ;;  %v3063_v27 = vld [vmem:[%s5542_s29 + $0x1d0] sm:$0xff]  ;;  %v3048_v36 = vld [vmem:[%s5542_s29 + $0x158] sm:$0xff] }
 0x68c   : > { %v2749_v34 = vmul.f32 %v2748_v22, %v2743_v24  ;;  %v3045_v22 = vld [vmem:[%s5542_s29 + $0x140] sm:$0xff]  ;;  %v3031_v24 = vld [vmem:[%s5542_s29 + $0xd0] sm:$0xff]  ;;  %v5114_v35 = vpack.c.bf16 %v3064_v28, %v3063_v27 }
 0x68d   : > { %v5992_v49 = vadd.f32 %v2754_v26, %v2750_v38  ;;  %v5112_v31 = vpack.c.bf16 %v3046_v23, %v3045_v22  ;;  %v3047_v25 = vld [vmem:[%s5542_s29 + $0x150] sm:$0xff]  ;;  %v3033_v38 = vld [vmem:[%s5542_s29 + $0xe0] sm:$0xff] }
 0x68e   : > { %v5978_v37 = vadd.f32 %v2754_v26, %v2749_v34  ;;  %v3032_v26 = vld [vmem:[%s5542_s29 + $0xd8] sm:$0xff] }
 0x68f   : > { %v5082_v34 = vpack.c.bf16 %v3032_v26, %v3031_v24 }
 0x690   : > { %2908 = vmatmul.mubr.f32.vlgmr.msra.gmra.mrb[24].mxu1 %v5978_v37  ;;  %2985 = vmatmul.mubr.f32.vlgmr.msra.gmra.mrb[18].mxu0 %v5978_v37 }
 0x691   : > { %2913 = vmatprep.mubr.f32.mxu1 %v5381_v30  ;;  %2990 = vmatprep.mubr.f32.mxu0 %v5381_v30  ;;  %v3027_v30 = vld [vmem:[%s5542_s29 + $0xb0] sm:$0xff] }
 0x692   : > { %5065 = vmatpush3.bf16.msra.mxu1 %v5064_v39  ;;  %5097 = vmatpush3.bf16.msra.mxu0 %v5096_v63  ;;  %v5074_v3 = vpack.c.bf16 %v3028_v58, %v3027_v30  ;;  %v3034_v39 = vld [vmem:[%s5542_s29 + $0xe8] sm:$0xff]  ;;  %v3065_v63 = vld [vmem:[%s5542_s29 + $0x1e0] sm:$0xff]  ;;  %v5092_v58 = vpack.c.bf16 %v3020_v57, %v3019_v56 }
 0x693   : > { %5067 = vmatprep.subr.bf16.mxu1 %v5066_v42  ;;  %5099 = vmatprep.subr.bf16.mxu0 %v5098_v43  ;;  %v5116_v42 = vpack.c.bf16 %v3048_v36, %v3047_v25  ;;  %v5086_v43 = vpack.c.bf16 %v3034_v39, %v3033_v38  ;;  %v5118_v44 = vpack.c.bf16 %v3066_v40, %v3065_v63 }
 0x694   : > { %2914 = vmatmul.mubr.f32.gmra.mrb[26].mxu1 %v5992_v49  ;;  %2991 = vmatmul.mubr.f32.gmra.mrb[20].mxu0 %v5992_v49  ;;  %v3072_v36 = vrot.slane %v5878_v12, %v6042_v1 }
 0x696   : > { %5069 = vmatpush3.bf16.msra.mxu1 %v5068_v50  ;;  %5101 = vmatpush3.bf16.msra.mxu0 %v5100_v51  ;;  %v5120_v50 = vpack.c.bf16 %v3050_v48, %v3049_v46  ;;  %v3035_v51 = vld [vmem:[%s5542_s29 + $0xf0] sm:$0xff] }
 0x697   : > { %5071 = vmatprep.subr.bf16.mxu1 %v5070_v54  ;;  %5103 = vmatprep.subr.bf16.mxu0 %v5102_v55  ;;  %v5090_v54 = vpack.c.bf16 %v3036_v52, %v3035_v51  ;;  %v3068_v55 = vld [vmem:[%s5542_s29 + $0x1f8] sm:$0xff] }
 0x698   : > { %v5122_v30 = vpack.c.bf16 %v3068_v55, %v3067_v53 }
 0x69a   : > { %5073 = vmatpush3.bf16.msra.mxu1 %v5072_v62  ;;  %5105 = vmatpush3.bf16.msra.mxu0 %v5104_v0  ;;  %v5124_v62 = vpack.c.bf16 %v3052_v60, %v3051_v59  ;;  %v2821_v0 = vld [vmem:[%s5537_s0] sm:$0xf] }
 0x69b   : > { %5075 = vmatprep.subr.bf16.mxu1 %v5074_v3  ;;  %5107 = vmatprep.subr.bf16.mxu0 %v5106_v4  ;;  %v2826_v2 = vrot.slane %v2821_v0, %v5875_v11  ;;  %v2834_v3 = vrot.slane %v2821_v0, %v2747_v18  ;;  %v2830_v4 = vrot.slane %v2821_v0, %v6042_v1 }
 0x69c   : > { %v2838_v5 = vrot.slane %v2821_v0, %v2753_v19 }
 0x69e   : > { %5077 = vmatpush3.bf16.msra.mxu1 %v5076_v14  ;;  %5109 = vmatpush3.bf16.msra.mxu0 %v5108_v61 }
 0x69f   : > { %5079 = vmatprep.subr.bf16.mxu1 %v5078_v17  ;;  %5111 = vmatprep.subr.bf16.mxu0 %v5110_v21 }
 0x6a2   : > { %5081 = vmatpush3.bf16.msra.mxu1 %v5080_v29  ;;  %5113 = vmatpush3.bf16.msra.mxu0 %v5112_v31 }
 0x6a3   : > { %5083 = vmatprep.subr.bf16.mxu1 %v5082_v34  ;;  %5115 = vmatprep.subr.bf16.mxu0 %v5114_v35 }
 0x6a6   : > { %5085 = vmatpush3.bf16.msra.mxu1 %v5084_v41  ;;  %5117 = vmatpush3.bf16.msra.mxu0 %v5116_v42 }
 0x6a7   : > { %5087 = vmatprep.subr.bf16.mxu1 %v5086_v43  ;;  %5119 = vmatprep.subr.bf16.mxu0 %v5118_v44 }
 0x6aa   : > { %5089 = vmatpush3.bf16.msra.mxu1 %v5088_v47  ;;  %5121 = vmatpush3.bf16.msra.mxu0 %v5120_v50 }
 0x6ab   : > { %5091 = vmatprep.subr.bf16.mxu1 %v5090_v54  ;;  %5123 = vmatprep.subr.bf16.mxu0 %v5122_v30 }
 0x6ae   : > { %5093 = vmatpush3.bf16.msra.mxu1 %v5092_v58  ;;  %5125 = vmatpush3.bf16.msra.mxu0 %v5124_v62 }
 0x763   : > { %v2909_v6 = vpop.f32.mrb[24].mxu1  ;;  %v2986_v8 = vpop.f32.mrb[18].mxu0 }
 0x764   : > { %v2910_v9 = vadd.f32 %v2909_v6, %v2826_v2  ;;  %v2987_v10 = vadd.f32 %v2986_v8, %v2834_v3  ;;  %v2911_v13 = vpop.f32.mrb[25].mxu1  ;;  %v2988_v14 = vpop.f32.mrb[19].mxu0 }
 0x765   : > { %v2912_v61 = vadd.f32 %v2911_v13, %v2830_v4  ;;  %v2989_v15 = vadd.f32 %v2988_v14, %v2838_v5 }
 0x766   : > { %v2997_v23 = vmax.f32 %v2910_v9, 0.0  ;;  %v2999_v24 = vmax.f32 %v2987_v10, 0.0 }
 0x767   : > { %v2998_v16 = vmax.f32 %v2912_v61, 0.0  ;;  %v3000_v17 = vmax.f32 %v2989_v15, 0.0  ;;  %v2915_v21 = vpop.f32.mrb[26].mxu1  ;;  %v2992_v22 = vpop.f32.mrb[20].mxu0 }
 0x768   : > { %v2916_v18 = vadd.f32 %v2915_v21, %v2826_v2  ;;  %v2993_v26 = vadd.f32 %v2992_v22, %v2834_v3  ;;  %v2917_v27 = vpop.f32.mrb[27].mxu1  ;;  %v2994_v28 = vpop.f32.mrb[21].mxu0  ;;  %v3303_v22 = vld [vmem:[%s6188_s8 + $0x18] sm:$0xff] (!%p3609_p1) }
 0x769   : > { %v2918_v29 = vadd.f32 %v2917_v27, %v2830_v4  ;;  %v2995_v19 = vadd.f32 %v2994_v28, %v2838_v5  ;;  %3137 = vmatprep.mubr.f32.mxu1 %v2998_v16  ;;  %3212 = vmatprep.mubr.f32.mxu0 %v3000_v17  ;;  %v3255_v4 = vsub.s32 5, %v5805_v7  ;;  %v3302_v17 = vld [vmem:[%s6188_s8 + $0x10] sm:$0xff] (!%p3609_p1) }
 0x76a   : > { %3138 = vmatmul.mubr.f32.vlgmr.msra.gmra.mrb[28].mxu1 %v2997_v23  ;;  %3213 = vmatmul.mubr.f32.vlgmr.msra.gmra.mrb[22].mxu0 %v2999_v24  ;;  %v3001_v33 = vmax.f32 %v2916_v18, 0.0  ;;  %v3003_v34 = vmax.f32 %v2993_v26, 0.0  ;;  %v5130_v23 = vpack.c.bf16 (!%p3609_p1), %v3303_v22, %v3302_v17 }
 0x76b   : > { %v3002_v31 = vmax.f32 %v2918_v29, 0.0  ;;  %v3004_v32 = vmax.f32 %v2995_v19, 0.0  ;;  %v3256_v8 = vrot.slane %v5878_v12, %v3255_v4 }
 0x76d   : > { %3142 = vmatprep.mubr.f32.mxu1 %v3002_v31  ;;  %3217 = vmatprep.mubr.f32.mxu0 %v3004_v32  ;;  %v3304_v32 = vld [vmem:[%s6188_s8 + $0x20] sm:$0xff] (!%p3609_p1) }
 0x76e   : > { %3143 = vmatmul.mubr.f32.gmra.mrb[30].mxu1 %v3001_v33  ;;  %3218 = vmatmul.mubr.f32.gmra.mrb[24].mxu0 %v3003_v34  ;;  %v3305_v33 = vld [vmem:[%s6188_s8 + $0x28] sm:$0xff] (!%p3609_p1) }
 0x76f   : > { %v5134_v34 = vpack.c.bf16 (!%p3609_p1), %v3305_v33, %v3304_v32 }
 0x83d   : > { %v3925_v35 = vpop.f32.mrb[28].mxu1  ;;  %v3963_v25 = vpop.f32.mrb[22].mxu0 }
 0x83e   : > { %v3926_v38 = vpop.f32.mrb[29].mxu1  ;;  %v3964_v39 = vpop.f32.mrb[23].mxu0 }
 0x83f   : > { %v3927_v63 = vadd.f32 %v3926_v38, %v3925_v35  ;;  %v3965_v40 = vadd.f32 %v3964_v39, %v3963_v25  ;;  %v3306_v35 = vld [vmem:[%s6188_s8 + $0x30] sm:$0xff] (!%p3609_p1)  ;;  %v3307_v25 = vld [vmem:[%s6188_s8 + $0x38] sm:$0xff] (!%p3609_p1)  ;;  %v3308_v38 = vld [vmem:[%s6188_s8 + $0x40] sm:$0xff] (!%p3609_p1) }
 0x840   : > { %v3309_v39 = vld [vmem:[%s6188_s8 + $0x48] sm:$0xff] (!%p3609_p1) }
 0x841   : > { %v3140_v41 = vadd.f32 %v3927_v63, %v3072_v36  ;;  %v3928_v42 = vpop.f32.mrb[30].mxu1  ;;  %v3966_v43 = vpop.f32.mrb[24].mxu0  ;;  %v5142_v63 = vpack.c.bf16 (!%p3609_p1), %v3309_v39, %v3308_v38 }
 0x842   : > { %v3929_v44 = vpop.f32.mrb[31].mxu1  ;;  %v3967_v20 = vpop.f32.mrb[25].mxu0 }
 0x843   : > { %v3215_v45 = vadd.f32 %v3965_v40, %v3140_v41  ;;  %v3930_v46 = vadd.f32 %v3929_v44, %v3928_v42  ;;  %v3968_v47 = vadd.f32 %v3967_v20, %v3966_v43  ;;  %v3310_v40 = vld [vmem:[%s6188_s8 + $0x50] sm:$0xff] (!%p3609_p1)  ;;  %v3311_v41 = vld [vmem:[%s6188_s8 + $0x58] sm:$0xff] (!%p3609_p1)  ;;  %v3312_v42 = vld [vmem:[%s6188_s8 + $0x60] sm:$0xff] (!%p3609_p1) }
 0x844   : > { %v5146_v43 = vpack.c.bf16 (!%p3609_p1), %v3311_v41, %v3310_v40  ;;  %v3313_v44 = vld [vmem:[%s6188_s8 + $0x68] sm:$0xff] (!%p3609_p1) }
 0x845   : > { %v3145_v48 = vadd.f32 %v3930_v46, %v3072_v36  ;;  %v3223_v50 = vadd.f32 %v3215_v45, %v5978_v37  ;;  %v5138_v36 = vpack.c.bf16 (!%p3609_p1), %v3307_v25, %v3306_v35  ;;  %v5150_v20 = vpack.c.bf16 (!%p3609_p1), %v3313_v44, %v3312_v42  ;;  %v3314_v45 = vld [vmem:[%s6188_s8 + $0x70] sm:$0xff] (!%p3609_p1)  ;;  %v3315_v46 = vld [vmem:[%s6188_s8 + $0x78] sm:$0xff] (!%p3609_p1) }
 0x847   : > { %v3220_v51 = vadd.f32 %v3968_v47, %v3145_v48  ;;  %3225 = vadd.xlane.f32.xlu0 %v3223_v50  ;;  %v5154_v47 = vpack.c.bf16 (!%p3609_p1), %v3315_v46, %v3314_v45 }
 0x849   : > { %v3224_v52 = vadd.f32 %v3220_v51, %v5992_v49  ;;  %v3249_v49 = vsub.s32 4, %v5805_v7  ;;  %v3300_v7 = vld [vmem:[%s6188_s8] sm:$0xff] (!%p3609_p1) }
 0x84b   : > { %3227 = vadd.xlane.f32.xlu1 %v3224_v52  ;;  %v3250_v5 = vrot.slane %v5878_v12, %v3249_v49  ;;  %v3301_v12 = vld [vmem:[%s6188_s8 + $0x8] sm:$0xff] (!%p3609_p1) }
 0x84c   : > { %v5126_v21 = vpack.c.bf16 (!%p3609_p1), %v3301_v12, %v3300_v7 }
 0x84e   : > { %5127 = vmatprep.subr.bf16.mxu0 (!%p3609_p1), %v5126_v21 }
 0x84f   : > { %5129 = vmatpush3.bf16.msra.mxu0 (!%p3609_p1), %v5126_v21 }
 0x850   : > { %5131 = vmatprep.subr.bf16.mxu0 (!%p3609_p1), %v5130_v23 }
 0x853   : > { %5133 = vmatpush3.bf16.msra.mxu0 (!%p3609_p1), %v5130_v23 }
 0x854   : > { %5135 = vmatprep.subr.bf16.mxu0 (!%p3609_p1), %v5134_v34 }
 0x857   : > { %5137 = vmatpush3.bf16.msra.mxu0 (!%p3609_p1), %v5134_v34 }
 0x858   : > { %5139 = vmatprep.subr.bf16.mxu0 (!%p3609_p1), %v5138_v36 }
 0x85b   : > { %5141 = vmatpush3.bf16.msra.mxu0 (!%p3609_p1), %v5138_v36 }
 0x85c   : > { %5143 = vmatprep.subr.bf16.mxu0 (!%p3609_p1), %v5142_v63 }
 0x85f   : > { %5145 = vmatpush3.bf16.msra.mxu0 (!%p3609_p1), %v5142_v63 }
 0x860   : > { %5147 = vmatprep.subr.bf16.mxu0 (!%p3609_p1), %v5146_v43 }
 0x863   : > { %5149 = vmatpush3.bf16.msra.mxu0 (!%p3609_p1), %v5146_v43 }
 0x864   : > { %5151 = vmatprep.subr.bf16.mxu0 (!%p3609_p1), %v5150_v20 }
 0x867   : > { %5153 = vmatpush3.bf16.msra.mxu0 (!%p3609_p1), %v5150_v20 }
 0x868   : > { %5155 = vmatprep.subr.bf16.mxu0 (!%p3609_p1), %v5154_v47 }
 0x86b   : > { %5157 = vmatpush3.bf16.msra.mxu0 (!%p3609_p1), %v5154_v47 }
 0x8d4   : > { %v3226_v53 = vpop.xlane.xlu0 %3225 }
 0x8d5   : > { %v3229_v54 = vmul.f32 0.0078125, %v3226_v53 }
 0x8d7   : > { %v3231_v55 = vsub.f32 %v3223_v50, %v3229_v54 }
 0x8d8   : > { %v3228_v56 = vpop.xlane.xlu1 %3227 }
 0x8d9   : > { %v3230_v57 = vmul.f32 0.0078125, %v3228_v56  ;;  %v3233_v30 = vmul.f32 %v3231_v55, %v3231_v55 }
 0x8db   : > { %v3232_v58 = vsub.f32 %v3224_v52, %v3230_v57  ;;  %3235 = vadd.xlane.f32.xlu0 %v3233_v30 }
 0x8dd   : > { %v3234_v59 = vmul.f32 %v3232_v58, %v3232_v58 }
 0x8df   : > { %3237 = vadd.xlane.f32.xlu1 %v3234_v59 }
 0x968   : > { %v3236_v60 = vpop.xlane.xlu0 %3235 }
 0x969   : > { %v3239_v62 = vmul.f32 0.0078125, %v3236_v60 }
 0x96b   : > { %v3241_v0 = vadd.f32 1e-05, %v3239_v62 }
 0x96c   : > { %v3238_v2 = vpop.xlane.xlu1 %3237 }
 0x96d   : > { %5275 = vrsqrt.f32 %v3241_v0  ;;  %v3240_v37 = vmul.f32 0.0078125, %v3238_v2 }
 0x96f   : > { %v3242_v3 = vadd.f32 1e-05, %v3240_v37 }
 0x971   : > { %5277 = vrsqrt.f32 %v3242_v3  ;;  %v3610_v3 = vld [vmem:[%s6189_s9] ss:$0 sm:$0xff] (!%p3609_p1) }
 0x977   : > { %v5276_v6 = vpop.eup %5275 }
 0x978   : > { %v3245_v9 = vmul.f32 %v5276_v6, %v3231_v55  ;;  %v3265_v55 = vld [vmem:[%s6187_s7] sm:$0x3] (!%p3609_p1) }
 0x979   : > { %v3291_v56 = vrot.slane (!%p3609_p1), %v3265_v55, %v5875_v11 }
 0x97a   : > { %v3251_v10 = vmul.f32 %v3250_v5, %v3245_v9 }
 0x97b   : > { %v5278_v13 = vpop.eup %5277 }
 0x97c   : > { %v3257_v14 = vadd.f32 %v3256_v8, %v3251_v10  ;;  %v3246_v61 = vmul.f32 %v5278_v13, %v3232_v58  ;;  %3264 = sbr.rel (%p3609_p1) target bundleno = 2961 (0xb91), region = 68  ;;  %v3297_v58 = vrot.slane (!%p3609_p1), %v3265_v55, %v6042_v1 }
 0x97e   : > { %3259 = vst [vmem:[#allocation2] sm:$0xff] %v3257_v14  ;;  %v3252_v15 = vmul.f32 %v3250_v5, %v3246_v61  ;;  %3266 = vadd.xlane.f32.xlu0 (!%p3609_p1), %v3257_v14 }
 0x980   : > { %v3258_v16 = vadd.f32 %v3256_v8, %v3252_v15 }
 0x982   : > { %3260 = vst [vmem:[#allocation2 + $0x8] sm:$0xff] %v3258_v16  ;;  %3268 = vadd.xlane.f32.xlu0 (!%p3609_p1), %v3258_v16 }
 0xa0b   : > { %v3267_v24 = vpop.xlane.xlu0 %3266 }
 0xa0c   : > { %v3270_v18 = vmul.f32 0.0078125, %v3267_v24 }
 0xa0e   : > { %v3272_v26 = vsub.f32 %v3257_v14, %v3270_v18 }
 0xa0f   : > { %v3269_v27 = vpop.xlane.xlu0 %3268 }
 0xa10   : > { %v3271_v28 = vmul.f32 0.0078125, %v3269_v27  ;;  %v3274_v29 = vmul.f32 %v3272_v26, %v3272_v26 }
 0xa12   : > { %v3273_v19 = vsub.f32 %v3258_v16, %v3271_v28  ;;  %3276 = vadd.xlane.f32.xlu1 %v3274_v29 }
 0xa14   : > { %v3275_v31 = vmul.f32 %v3273_v19, %v3273_v19 }
 0xa16   : > { %3278 = vadd.xlane.f32.xlu1 %v3275_v31 }
 0xa9f   : > { %v3277_v48 = vpop.xlane.xlu1 %3276 }
 0xaa0   : > { %v3280_v50 = vmul.f32 0.0078125, %v3277_v48 }
 0xaa2   : > { %v3282_v51 = vadd.f32 1e-05, %v3280_v50 }
 0xaa3   : > { %v3279_v52 = vpop.xlane.xlu1 %3278 }
 0xaa4   : > { %5281 = vrsqrt.f32 %v3282_v51  ;;  %v3281_v53 = vmul.f32 0.0078125, %v3279_v52 }
 0xaa6   : > { %v3283_v54 = vadd.f32 1e-05, %v3281_v53 }
 0xaa8   : > { %5283 = vrsqrt.f32 %v3283_v54 }
 0xaae   : > { %v5282_v57 = vpop.eup %5281 }
 0xaaf   : > { %v3286_v30 = vmul.f32 %v5282_v57, %v3272_v26 }
 0xab1   : > { %v3292_v59 = vmul.f32 %v3291_v56, %v3286_v30 }
 0xab2   : > { %v5284_v60 = vpop.eup %5283 }
 0xab3   : > { %v3298_v62 = vadd.f32 %v3297_v58, %v3292_v59  ;;  %v3287_v0 = vmul.f32 %v5284_v60, %v3273_v19 }
 0xab5   : > { %4539 = vmatprep.mubr.f32.mxu0 %v3298_v62  ;;  %v3293_v2 = vmul.f32 %v3291_v56, %v3287_v0 }
 0xab7   : > { %v3299_v37 = vadd.f32 %v3297_v58, %v3293_v2 }
 0xab9   : > { %4540 = vmatmul.mubr.f32.vlgmr.msra.gmra.mrb[0].mxu0 %v3299_v37 }
 0xb8c   : > { %v4541_v49 = vpop.f32.mrb[0].mxu0 }
 0xb8d   : > { %v3395_v11 = vadd.f32 %v4541_v49, %v3610_v3  ;;  %v3389_v4 = vpop.f32.mrb[1].mxu0 }
 0xb8e   : > { %v3390_v5 = vadd.f32 %v3610_v3, %v3389_v4 }
 0xb8f   : > { %3399 = vst [vmem:[%s5549_s10 + $0x8] sm:$0xff] %v3395_v11 }
 0xb90   : > { %3398 = vst [vmem:[%s5549_s10] sm:$0xff] %v3390_v5 }
 0xb91 PF: > { %s6222_s28 = sld [smem:[#allocation7_spill]]  ;;  %s3620_s19 = sshll.u32 %s5367_s17, 8 }
 0xb92   : > { %s6224_s14 = sld [smem:[#allocation18_spill]]  ;;  %s3414_s26 = sshll.u32 %s5549_s10, 4  ;;  %s6124_s26 = int_to_ptr.vmem [resolvable:$true] %s3414_s26 }
 0xb93   : > { %s5285_s21 = scalar_lea.vmem %s6124_s26, 256  ;;  %s5382_s17 = smov [#allocation3]  }
 0xb94   : > { %p5286_p2 = scmp.ne.s32.totalorder %s6124_s26, %s5285_s21  ;;  %s5289_s16 = sshll.u32 %s5382_s17, 4  ;;  %s5290_s16 = int_to_ptr.vmem [resolvable:$false] %s5289_s16 }
 0xb95   : > { %s5291_s27 = scalar_lea.vmem %s5290_s16, 512  ;;  %p5292_p6 = scmp.lt.s32.totalorder %s6124_s26, %s5290_s16 }
 0xb96   : > { %p5287_p4 = pnand %p5286_p2, %p5489_p3  ;;  %p5293_p7 = scmp.lt.s32.totalorder %s5291_s27, %s5285_s21 }
 0xb97   : > { %s6226_s30 = sand.u32 1, %s6222_s28  }
 0xb98   : > { %s6225_s25 = smov %s6224_s14  ;;  %s6121_s18 = scalar_lea.hbm %s6224_s14, %s3620_s19 }
 0xb99   : > { %s6128_s11 = scalar_lea.sflag [#allocation4], %s6226_s30  ;;  %p5288_p5 = pneg %p5287_p4 }
 0xb9a   : > { %p5294_p8 = por %p5293_p7, %p5292_p6 }
 0xb9c   : > { %p5295_p10 = pnand %p5294_p8, %p5288_p5 }
 0xb9e   : > { %5298 = shalt.err (!%p5295_p10)
}
 0xb9f   : > { %s5299_s10 = scalar_lea.hbm %s6121_s18, 256  ;;  %s5303_s24 = scalar_lea.hbm %s6225_s25, 512 }
 0xba0   : > { %p5300_p11 = scmp.ne.s32.totalorder %s6121_s18, %s5299_s10  ;;  %p5304_p0 = scmp.lt.u32.totalorder %s6121_s18, %s6225_s25 }
 0xba1   : > { %p5305_p1 = scmp.lt.u32.totalorder %s5303_s24, %s5299_s10  ;;  %p5307_p4 = scmp.lt.u32.totalorder %s5299_s10, %s6121_s18 }
 0xba2   : > { %p5301_p12 = pnand %p5300_p11, %p5489_p3 }
 0xba3   : > { %p5306_p2 = por %p5305_p1, %p5304_p0 }
 0xba4   : > { %p5302_p13 = pneg %p5301_p12 }
 0xba5   : > { %p5308_p5 = por %p5307_p4, %p5306_p2 }
 0xba7   : > { %p5309_p6 = pnand %p5308_p5, %p5302_p13 }
 0xba9   : > { %5312 = shalt.err (!%p5309_p6)
}
 0xbaa   : > { %s5383_s29 = smov 128   ;;  %s5384_s28 = smov 8  }
 0xbab   : > { %5165 = dma.vmem_to_hbm [thread:$0]  (%p5489_p3), %s6124_s26, 256, %s6121_s18, %s6128_s11, %s5383_s29, %s5383_s29, %s5384_s28  }
 0xbac PF: > { %s6227_s19 = sld [smem:[#allocation11_spill]]  ;;  %s6228_s20 = sld [smem:[#allocation6_spill]] }
 0xbb2   : > { %p5171_p7 = scmp.ge.s32.totalorder %s6227_s19, 2  ;;  %s3429_s14 = sand.u32 1, %s6228_s20  }
 0xbb3   : > { %s3430_s30 = scalar_lea.sflag [#allocation4], %s3429_s14 }
 0xbb4   : > { %p5168_p8 = pnand %p5171_p7, %p5499_p9 }
 0xbb6   : > { %5346 = dma.done.wait (!%p5168_p8), %s3430_s30, 256  }
 0xbb7   : > { %5348 = vsyncadd (!%p5168_p8), %s3430_s30, 4294967040  ;;  %s23_s20 = sadd.s32 1, %s6227_s19   ;;  %s6230_s13 = sld [smem:[#allocation7_spill]] }
 0xbb8   : > { %p20_p10 = scmp.ge.s32.totalorder %s23_s20, 6   ;;  %s6231_s14 = sld [smem:[#allocation8_spill]] }
 0xbb9   : > { %s6232_s15 = sld [smem:[#allocation16_spill]]  ;;  %s6233_s16 = sld [smem:[#allocation9_spill]] }
 0xbba   : > { %s6234_s17 = sld [smem:[#allocation10_spill]]  ;;  %s6235_s18 = sld [smem:[#allocation12_spill]] }
 0xbbb   : > { %s6236_s19 = sld [smem:[#allocation14_spill]]  ;;  %22 = sbr.rel (!%p20_p10) target bundleno = 8 (0x8), region = 121 }
 0xbc2   :  { %3435 = vsyncpa [#allocation4], 1 }
 0xbc3   :  { %3437 = vsyncpa [#allocation4 + $0x1], 1 }

</bundles_post_ra>
